<compile_context>
chip_gen: v7x
topology: tpu7x:2x2x1
jax: 0.10.0
libtpu: 0.0.40
codegen_flags: <defaults>
</compile_context>

<pallas_src>
from functools import partial

import jax
import jax.numpy as jnp
from jax.experimental import pallas as pl
from jax.experimental.pallas import tpu as pltpu


# ----------------------------------------------------------------------------
# Generation-aware tiling / VMEM budget
# ----------------------------------------------------------------------------
def _round_up(x, m):
    return (x + m - 1) // m * m


def _chip_vmem_cap():
    try:
        info = pltpu.get_tpu_info()
        return int(getattr(info, "vmem_capacity_bytes", 128 << 20))
    except Exception:
        return 128 << 20


_VMEM_CAP = _chip_vmem_cap()
_SMALL_VMEM = _VMEM_CAP <= (64 << 20)            # v7x-class: 64 MiB VMEM
_LANE_TILE_PREF = 1024 if _SMALL_VMEM else 2048
_REGRESS_TILE_PREF = 512 if _SMALL_VMEM else 1024
_VMEM_LIMIT = min(int(_VMEM_CAP * 0.7), 80 << 20)


def _cparams(dims):
    return pltpu.CompilerParams(dimension_semantics=dims,
                                vmem_limit_bytes=_VMEM_LIMIT)


def _hw_tiling(hw, pref=None):
    """Pick (padded_hw, tile) for a flattened H*W lane axis."""
    pref = _LANE_TILE_PREF if pref is None else pref
    if hw <= 128:
        return hw, hw                    # full-extent block is always legal
    hwp = _round_up(hw, 128)
    t = min(pref, hwp)
    while hwp % t:
        t -= 128
    return hwp, t


def _pad_lanes(x, hwp):
    hw = x.shape[-1]
    if hwp == hw:
        return x
    pad = [(0, 0)] * (x.ndim - 1) + [(0, hwp - hw)]
    return jnp.pad(x, pad)


# ----------------------------------------------------------------------------
# Direct conv kernel: taps as static lane offsets into a flattened plane.
# x stays channel-on-sublane / HW-on-lane; f32 accumulate; fused bias + ReLU.
# ----------------------------------------------------------------------------
def _conv_flat_kernel(x_ref, w_ref, b_ref, o_ref, *, taps, l_out, activation):
    cout = w_ref.shape[1]
    acc = jnp.zeros((cout, l_out), jnp.float32)
    for t, (p, off) in enumerate(taps):                  # unrolled static loop
        xs = x_ref[0, p, :, off:off + l_out]             # (Cin, l_out) bf16
        acc = acc + jnp.dot(w_ref[t], xs, preferred_element_type=jnp.float32)
    acc = acc + b_ref[...]
    if activation == "relu":
        acc = jnp.maximum(acc, 0.0)
    o_ref[0] = acc.astype(o_ref.dtype)


@partial(jax.jit, static_argnums=(3, 4, 5, 6, 7))
def conv2d(x, w, b, stride, padding, dilation, activation=None,
           out_dtype=jnp.bfloat16):
    """NCHW conv. padding: int or ((top,bottom),(left,right))."""
    B, C, H, W = x.shape
    O, _, KH, KW = w.shape
    if isinstance(padding, int):
        pt = pb = pleft = pright = padding
    else:
        (pt, pb), (pleft, pright) = padding
    Hp = H + pt + pb
    Wp = W + pleft + pright
    OH = (Hp - dilation * (KH - 1) - 1) // stride + 1
    OW = (Wp - dilation * (KW - 1) - 1) // stride + 1
    xb = x.astype(jnp.bfloat16)

    if stride == 1:
        Ws = Wp
        taps = tuple((0, i * dilation * Wp + j * dilation)
                     for i in range(KH) for j in range(KW))
        P = 1
        l_out = _round_up(OH * Ws, 128)
        maxoff = dilation * (KH - 1) * Wp + dilation * (KW - 1)
        need = l_out + maxoff
        er = max(0, (need - Hp * Wp + Wp - 1) // Wp)
        xp = jnp.pad(xb, ((0, 0), (0, 0), (pt, pb + er), (pleft, pright)))
        l_in = (Hp + er) * Wp
        xf = xp.reshape(B, 1, C, l_in)
    elif stride == 2:
        Hp2, Wp2 = _round_up(Hp, 2), _round_up(Wp, 2)
        Hs, Ws = Hp2 // 2, Wp2 // 2
        taps = tuple(((i * dilation % 2) * 2 + (j * dilation % 2),
                      (i * dilation // 2) * Ws + (j * dilation // 2))
                     for i in range(KH) for j in range(KW))
        P = 4
        l_out = _round_up(OH * Ws, 128)
        maxoff = (dilation * (KH - 1) // 2) * Ws + dilation * (KW - 1) // 2
        need = l_out + maxoff
        er = max(0, (need - Hs * Ws + Ws - 1) // Ws)
        xp = jnp.pad(xb, ((0, 0), (0, 0),
                          (pt, pb + (Hp2 - Hp) + 2 * er),
                          (pleft, pright + (Wp2 - Wp))))
        Hst = Hs + er
        xp = xp.reshape(B, C, Hst, 2, Ws, 2).transpose(0, 3, 5, 1, 2, 4)
        l_in = Hst * Ws
        xf = xp.reshape(B, 4, C, l_in)
    else:
        raise NotImplementedError("stride must be 1 or 2")

    wmat = w.transpose(2, 3, 0, 1).reshape(KH * KW, O, C).astype(jnp.bfloat16)
    bcol = (jnp.zeros((O, 1), jnp.float32) if b is None
            else b.reshape(O, 1).astype(jnp.float32))

    out = pl.pallas_call(
        partial(_conv_flat_kernel, taps=taps, l_out=l_out, activation=activation),
        grid=(B,),
        in_specs=[pl.BlockSpec((1, P, C, l_in), lambda bb: (bb, 0, 0, 0)),
                  pl.BlockSpec((KH * KW, O, C), lambda bb: (0, 0, 0)),
                  pl.BlockSpec((O, 1), lambda bb: (0, 0))],
        out_specs=pl.BlockSpec((1, O, l_out), lambda bb: (bb, 0, 0)),
        out_shape=jax.ShapeDtypeStruct((B, O, l_out), out_dtype),
        compiler_params=_cparams(("parallel",)),
    )(xf, wmat, bcol)

    out = out[:, :, :OH * Ws].reshape(B, O, OH, Ws)[:, :, :, :OW]
    return out


@jax.jit
def conv_transpose2d_s2(x, w_t):
    """ConvTranspose2d(k=3, stride=2, padding=1, output_padding=1, bias=False)
    as a single 2x2-tap stride-1 conv producing the 4 sub-pixel phases."""
    B, C, H, W = x.shape
    Ci, Co = w_t.shape[0], w_t.shape[1]
    wt = w_t.transpose(1, 0, 2, 3)                        # (Co, Ci, 3, 3)
    w_eff = jnp.zeros((4 * Co, Ci, 2, 2), w_t.dtype)
    w_eff = w_eff.at[0 * Co:1 * Co, :, 0, 0].set(wt[:, :, 1, 1])
    w_eff = w_eff.at[1 * Co:2 * Co, :, 0, 0].set(wt[:, :, 1, 2])
    w_eff = w_eff.at[1 * Co:2 * Co, :, 0, 1].set(wt[:, :, 1, 0])
    w_eff = w_eff.at[2 * Co:3 * Co, :, 0, 0].set(wt[:, :, 2, 1])
    w_eff = w_eff.at[2 * Co:3 * Co, :, 1, 0].set(wt[:, :, 0, 1])
    w_eff = w_eff.at[3 * Co:4 * Co, :, 0, 0].set(wt[:, :, 2, 2])
    w_eff = w_eff.at[3 * Co:4 * Co, :, 0, 1].set(wt[:, :, 2, 0])
    w_eff = w_eff.at[3 * Co:4 * Co, :, 1, 0].set(wt[:, :, 0, 2])
    w_eff = w_eff.at[3 * Co:4 * Co, :, 1, 1].set(wt[:, :, 0, 0])
    out4 = conv2d(x, w_eff, None, 1, ((0, 1), (0, 1)), 1, None, jnp.bfloat16)
    out4 = out4.reshape(B, 2, 2, Co, H, W).transpose(0, 3, 4, 1, 5, 2)
    return out4.reshape(B, Co, 2 * H, 2 * W)


@jax.jit
def avg_pool2x(x):
    # F.avg_pool2d(x, 3, stride=2, padding=1), count_include_pad=True
    B, C, H, W = x.shape
    eye = jnp.eye(C, dtype=jnp.float32) / 9.0
    w = jnp.broadcast_to(eye[:, :, None, None], (C, C, 3, 3))
    return conv2d(x, w, None, 2, 1, 1, None, jnp.bfloat16)


@partial(jax.jit, static_argnums=(1, 2, 3))
def resize_bilinear(x, out_h, out_w, align_corners):
    B, C, H, W = x.shape
    if align_corners:
        ys = jnp.arange(out_h, dtype=jnp.float32) * ((H - 1) / max(out_h - 1, 1))
        xs = jnp.arange(out_w, dtype=jnp.float32) * ((W - 1) / max(out_w - 1, 1))
    else:
        ys = jnp.clip((jnp.arange(out_h, dtype=jnp.float32) + 0.5) * (H / out_h) - 0.5, 0.0, H - 1)
        xs = jnp.clip((jnp.arange(out_w, dtype=jnp.float32) + 0.5) * (W / out_w) - 0.5, 0.0, W - 1)
    y0 = jnp.floor(ys).astype(jnp.int32)
    x0 = jnp.floor(xs).astype(jnp.int32)
    y1 = jnp.minimum(y0 + 1, H - 1)
    x1 = jnp.minimum(x0 + 1, W - 1)
    wy = (ys - y0.astype(jnp.float32))[None, None, :, None]
    wx = (xs - x0.astype(jnp.float32))[None, None, None, :]
    g = lambda yi, xi: x[:, :, yi, :][:, :, :, xi]
    top = g(y0, x0) * (1 - wx) + g(y0, x1) * wx
    bot = g(y1, x0) * (1 - wx) + g(y1, x1) * wx
    return top * (1 - wy) + bot * wy


# ----------------------------------------------------------------------------
# Pallas kernels: per-pixel depth-axis ops (lane-tiled over H*W)
# ----------------------------------------------------------------------------
def _depth_init_kernel(imin_ref, imax_ref, o_ref):
    ns, t = o_ref.shape[1], o_ref.shape[2]
    imin = imin_ref[0]
    imax = imax_ref[0]
    d = jax.lax.broadcasted_iota(jnp.float32, (ns, t), 0) / float(ns - 1)
    o_ref[0] = 1.0 / (imax + d * (imin - imax))


@partial(jax.jit, static_argnums=(2, 3, 4))
def depth_initialization(inv_min, inv_max, height, width, num_sample):
    B = inv_min.shape[0]
    HW = height * width
    HWp, tile = _hw_tiling(HW)
    out = pl.pallas_call(
        _depth_init_kernel,
        grid=(B, HWp // tile),
        in_specs=[pl.BlockSpec((1, 1, 1), lambda b, t: (b, 0, 0)),
                  pl.BlockSpec((1, 1, 1), lambda b, t: (b, 0, 0))],
        out_specs=pl.BlockSpec((1, num_sample, tile), lambda b, t: (b, 0, t)),
        out_shape=jax.ShapeDtypeStruct((B, num_sample, HWp), jnp.float32),
        compiler_params=_cparams(("parallel", "parallel")),
    )(inv_min.reshape(B, 1, 1), inv_max.reshape(B, 1, 1))
    return out[:, :, :HW].reshape(B, num_sample, height, width)


def _corr_mean_kernel(w_ref, r_ref, o_ref):
    w = w_ref[0].astype(jnp.float32)            # (Cg, D, T)
    r = r_ref[0].astype(jnp.float32)            # (Cg, T)
    o_ref[0] = jnp.mean(w * r[:, None, :], axis=0)


@partial(jax.jit, static_argnums=(2,))
def group_correlation(warped, ref, G):
    # warped: (B, C, D, H, W) bf16, ref: (B, C, H, W) bf16 -> (B, G, D, H, W) f32
    B, C, D, H, W = warped.shape
    Cg = C // G
    HW = H * W
    HWp, tile = _hw_tiling(HW)
    w = _pad_lanes(warped.reshape(B * G, Cg, D, HW), HWp)
    r = _pad_lanes(ref.astype(warped.dtype).reshape(B * G, Cg, HW), HWp)
    out = pl.pallas_call(
        _corr_mean_kernel,
        grid=(B * G, HWp // tile),
        in_specs=[pl.BlockSpec((1, Cg, D, tile), lambda i, t: (i, 0, 0, t)),
                  pl.BlockSpec((1, Cg, tile), lambda i, t: (i, 0, t))],
        out_specs=pl.BlockSpec((1, D, tile), lambda i, t: (i, 0, t)),
        out_shape=jax.ShapeDtypeStruct((B * G, D, HWp), jnp.float32),
        compiler_params=_cparams(("parallel", "parallel")),
    )(w, r)
    return out[:, :, :HW].reshape(B, G, D, H, W)


def _softmax_max_kernel(x_ref, o_ref):
    x = x_ref[0]                                 # (D, T)
    m = jnp.max(x, axis=0, keepdims=True)
    e = jnp.exp(x - m)
    inv_s = pl.reciprocal(jnp.sum(e, axis=0, keepdims=True), approx=True)
    o_ref[0] = jnp.max(e, axis=0, keepdims=True) * inv_s


def _expected_index_kernel(x_ref, o_ref):
    x = x_ref[0]
    m = jnp.max(x, axis=0, keepdims=True)
    e = jnp.exp(x - m)
    inv_s = pl.reciprocal(jnp.sum(e, axis=0, keepdims=True), approx=True)
    idx = jax.lax.broadcasted_iota(jnp.float32, x.shape, 0)
    o_ref[0] = jnp.sum(idx * e, axis=0, keepdims=True) * inv_s


def _depthwise_reduce(kernel, x):
    B, D, H, W = x.shape
    HW = H * W
    HWp, tile = _hw_tiling(HW)
    xr = _pad_lanes(x.astype(jnp.float32).reshape(B, D, HW), HWp)
    out = pl.pallas_call(
        kernel,
        grid=(B, HWp // tile),
        in_specs=[pl.BlockSpec((1, D, tile), lambda b, t: (b, 0, t))],
        out_specs=pl.BlockSpec((1, 1, tile), lambda b, t: (b, 0, t)),
        out_shape=jax.ShapeDtypeStruct((B, 1, HWp), jnp.float32),
        compiler_params=_cparams(("parallel", "parallel")),
    )(xr)
    return out[:, :, :HW].reshape(B, 1, H, W)


@jax.jit
def softmax_max(x):
    return _depthwise_reduce(_softmax_max_kernel, x)


@jax.jit
def expected_index(x):
    return _depthwise_reduce(_expected_index_kernel, x)


# ----------------------------------------------------------------------------
# Fused depth head tail: 1x1 conv (Cf->256) + softmax + windowed regression
# ----------------------------------------------------------------------------
RADIUS = 4


def _depth_regress_kernel(x_ref, w_ref, b_ref, p_ref, d_ref, *, radius):
    x = x_ref[0]                                               # (Cf, T) bf16
    logits = jnp.dot(w_ref[...], x, preferred_element_type=jnp.float32) + b_ref[...]
    ns = logits.shape[0]
    m = jnp.max(logits, axis=0, keepdims=True)
    e = jnp.exp(logits - m)
    inv_s = pl.reciprocal(jnp.sum(e, axis=0, keepdims=True), approx=True)
    p = e * inv_s
    p_ref[0] = p
    chan = jax.lax.broadcasted_iota(jnp.float32, logits.shape, 0)
    # lowest index achieving the max (argmax with lowest-index tie-break)
    amax = jnp.min(jnp.where(logits == m, chan, float(ns)), axis=0, keepdims=True)
    mask = (chan >= amax - radius) & (chan <= amax + radius)
    regress = jnp.sum(jnp.where(mask, chan * p, 0.0), axis=0, keepdims=True)
    psum = jnp.sum(jnp.where(mask, p, 0.0), axis=0, keepdims=True) + 1e-6
    # boundary duplicates reproduce torch's clamped-gather double counting
    n_low = jnp.maximum(radius - amax, 0.0)
    n_high = jnp.maximum(amax + radius - (ns - 1), 0.0)
    p_last = p[ns - 1:ns, :]
    regress = regress + n_high * float(ns - 1) * p_last
    psum = psum + n_low * p[0:1, :] + n_high * p_last
    d_ref[0] = regress * pl.reciprocal(psum, approx=True) * (1.0 / float(ns - 1))


@jax.jit
def depth_regress(feat, w, b):
    """feat (B,Cf,H,W) bf16, w (NS,Cf,1,1), b (NS,) -> (depth (B,1,H,W), prob (B,NS,H,W))."""
    B, Cf, H, W = feat.shape
    NS = w.shape[0]
    HW = H * W
    HWp, tile = _hw_tiling(HW, pref=_REGRESS_TILE_PREF)
    xr = _pad_lanes(feat.astype(jnp.bfloat16).reshape(B, Cf, HW), HWp)
    wmat = w.reshape(NS, Cf).astype(jnp.bfloat16)
    bcol = b.reshape(NS, 1).astype(jnp.float32)
    p, d = pl.pallas_call(
        partial(_depth_regress_kernel, radius=RADIUS),
        grid=(B, HWp // tile),
        in_specs=[pl.BlockSpec((1, Cf, tile), lambda bb, t: (bb, 0, t)),
                  pl.BlockSpec((NS, Cf), lambda bb, t: (0, 0)),
                  pl.BlockSpec((NS, 1), lambda bb, t: (0, 0))],
        out_specs=[pl.BlockSpec((1, NS, tile), lambda bb, t: (bb, 0, t)),
                   pl.BlockSpec((1, 1, tile), lambda bb, t: (bb, 0, t))],
        out_shape=(jax.ShapeDtypeStruct((B, NS, HWp), jnp.float32),
                   jax.ShapeDtypeStruct((B, 1, HWp), jnp.float32)),
        compiler_params=_cparams(("parallel", "parallel")),
    )(xr, wmat, bcol)
    return (d[:, :, :HW].reshape(B, 1, H, W),
            p[:, :, :HW].reshape(B, NS, H, W))


# ----------------------------------------------------------------------------
# Fused ConvLSTM gate nonlinearities / cell update (lane-tiled)
# ----------------------------------------------------------------------------
def _lstm_fuse_kernel(g_ref, c_ref, h_out, c_out, *, hidden):
    g = g_ref[0]                                               # (4*hidden, T) f32
    i = jax.nn.sigmoid(g[0 * hidden:1 * hidden])
    f = jax.nn.sigmoid(g[1 * hidden:2 * hidden])
    o = jax.nn.sigmoid(g[2 * hidden:3 * hidden])
    gg = jnp.tanh(g[3 * hidden:4 * hidden])
    c_new = f * c_ref[0] + i * gg
    c_out[0] = c_new
    h_out[0] = (o * jnp.tanh(c_new)).astype(h_out.dtype)


@jax.jit
def lstm_fuse(gates, c):
    B, C4, H, W = gates.shape
    hidden = C4 // 4
    HW = H * W
    HWp, tile = _hw_tiling(HW)
    g = _pad_lanes(gates.astype(jnp.float32).reshape(B, C4, HW), HWp)
    cr = _pad_lanes(c.astype(jnp.float32).reshape(B, hidden, HW), HWp)
    h_new, c_new = pl.pallas_call(
        partial(_lstm_fuse_kernel, hidden=hidden),
        grid=(B, HWp // tile),
        in_specs=[pl.BlockSpec((1, C4, tile), lambda b, t: (b, 0, t)),
                  pl.BlockSpec((1, hidden, tile), lambda b, t: (b, 0, t))],
        out_specs=[pl.BlockSpec((1, hidden, tile), lambda b, t: (b, 0, t)),
                   pl.BlockSpec((1, hidden, tile), lambda b, t: (b, 0, t))],
        out_shape=(jax.ShapeDtypeStruct((B, hidden, HWp), jnp.bfloat16),
                   jax.ShapeDtypeStruct((B, hidden, HWp), jnp.float32)),
        compiler_params=_cparams(("parallel", "parallel")),
    )(g, cr)
    sl = lambda a: a[:, :, :HW].reshape(B, hidden, H, W)
    return sl(h_new), sl(c_new)


# ----------------------------------------------------------------------------
# Warping / upsampling glue (XLA)
# ----------------------------------------------------------------------------
def _grid_sample_bilinear(src, gx, gy):
    # src (B,C,Hs,Ws); gx, gy (B,N) normalized [-1,1]; align_corners=True, zeros padding
    B, C, Hs, Ws = src.shape
    N = gx.shape[1]
    x = (gx + 1.0) * (Ws - 1) / 2.0
    y = (gy + 1.0) * (Hs - 1) / 2.0
    x0 = jnp.floor(x)
    y0 = jnp.floor(y)
    x1, y1 = x0 + 1, y0 + 1
    wx1, wy1 = x - x0, y - y0
    wx0, wy0 = 1 - wx1, 1 - wy1
    flat = src.reshape(B, C, Hs * Ws)

    # TODO(synk): replace take_along_axis with a Pallas DMA-gather / one-hot MXU kernel.
    def gather(yi, xi):
        valid = (xi >= 0) & (xi <= Ws - 1) & (yi >= 0) & (yi <= Hs - 1)
        xi_c = jnp.clip(xi, 0, Ws - 1).astype(jnp.int32)
        yi_c = jnp.clip(yi, 0, Hs - 1).astype(jnp.int32)
        idx = yi_c * Ws + xi_c
        v = jnp.take_along_axis(flat, jnp.broadcast_to(idx[:, None, :], (B, C, N)), axis=2)
        return v * valid[:, None, :].astype(src.dtype)

    out = (gather(y0, x0) * (wy0 * wx0)[:, None, :] + gather(y0, x1) * (wy0 * wx1)[:, None, :]
           + gather(y1, x0) * (wy1 * wx0)[:, None, :] + gather(y1, x1) * (wy1 * wx1)[:, None, :])
    return out                                               # (B, C, N) f32


@jax.jit
def differentiable_warping(src_fea, src_proj, ref_proj, depth_samples):
    B, C, Hs, Ws = src_fea.shape
    _, D, H, W = depth_samples.shape
    proj = src_proj @ jnp.linalg.inv(ref_proj)
    rot = proj[:, :3, :3]
    trans = proj[:, :3, 3:4]
    yy, xx = jnp.meshgrid(jnp.arange(H, dtype=jnp.float32),
                          jnp.arange(W, dtype=jnp.float32), indexing='ij')
    xyz = jnp.stack([xx.reshape(-1), yy.reshape(-1), jnp.ones(H * W, jnp.float32)], axis=0)
    rot_xyz = rot @ xyz[None]
    rot_depth = rot_xyz[:, :, None, :] * depth_samples.reshape(B, 1, D, H * W)
    proj_xyz = rot_depth + trans[:, :, None, :]
    z = proj_xyz[:, 2]
    gx = (proj_xyz[:, 0] / z) / ((Ws - 1) / 2.0) - 1.0
    gy = (proj_xyz[:, 1] / z) / ((Hs - 1) / 2.0) - 1.0
    warped = _grid_sample_bilinear(src_fea, gx.reshape(B, -1), gy.reshape(B, -1))
    return warped.reshape(B, C, D, H, W).astype(jnp.bfloat16)


def depth_unnormalization(normalized_depth, inverse_depth_min, inverse_depth_max):
    return 1.0 / (inverse_depth_max + normalized_depth * (inverse_depth_min - inverse_depth_max))


@jax.jit
def convex_upsample(x, weight):
    # x (B,1,H,W); weight (B,1,9,s,s,H,W) already softmaxed over dim=2
    B, _, H, W = x.shape
    scale = weight.shape[3]
    xp = jnp.pad(x, ((0, 0), (0, 0), (1, 1), (1, 1)))
    patches = jnp.stack([xp[:, :, i:i + H, j:j + W] for i in range(3) for j in range(3)], axis=2)
    up = jnp.sum(weight * patches[:, :, :, None, None, :, :], axis=2)
    return up.transpose(0, 1, 4, 2, 5, 3).reshape(B, 1, H * scale, W * scale)


# ----------------------------------------------------------------------------
# Sub-module forwards
# ----------------------------------------------------------------------------
G_EVAL = 8
NUM_SAMPLE = 32
OUT_NUM_SAMPLES = 256
INTERVAL_SCALE = 1.0 / 256
CORR_INTERVAL = {
    'level1': jnp.array([-2.0, -2.0 / 3, 2.0 / 3, 2.0], jnp.float32).reshape(1, 4, 1, 1),
    'level2': jnp.array([-8.0, -8.0 / 3, 8.0 / 3, 8.0], jnp.float32).reshape(1, 4, 1, 1),
    'level3': jnp.array([-32.0, 32.0], jnp.float32).reshape(1, 2, 1, 1),
}


def pixel_view_weight(p, x5d):
    B, dim, D, H, W = x5d.shape
    x = x5d.transpose(0, 2, 1, 3, 4).reshape(B * D, dim, H, W)
    x = conv2d(x, p['w0'], None, 1, 1, 1, 'relu')
    x = conv2d(x, p['w1'], p['b1'], 1, 0, 1, None, jnp.float32)
    x = x.reshape(B, D, H, W)
    return softmax_max(x)


def corrnet(p, x5d):
    B, dim, D, H, W = x5d.shape
    x = x5d.transpose(0, 2, 1, 3, 4).reshape(B * D, dim, H, W)
    c0 = conv2d(x, p['conv0'], None, 1, 1, 1, 'relu')
    c1 = conv2d(c0, p['conv1'], None, 2, 1, 1, 'relu')
    x = conv2d(c1, p['conv2'], None, 2, 1, 1, 'relu')
    x = c1 + conv_transpose2d_s2(x, p['conv3'])
    x = c0 + conv_transpose2d_s2(x, p['conv4'])
    x = conv2d(x, p['conv5'], p['conv5_b'], 1, 1, 1, None, jnp.float32)
    return x.reshape(B, D, H, W)


def evaluation(params, ref_feature, src_features, ref_proj, src_projs, depth_sample,
               inverse_depth_min=None, inverse_depth_max=None, view_weights=None):
    if view_weights is None:
        correlation_sum = 0.0
        view_weight_sum = 1e-5
        vw_list = []
        rf = ref_feature['level3']
        B, dim, H, W = rf.shape
        num_sample = depth_sample.shape[1]
        for sf, sp in zip(src_features['level3'], src_projs['level3']):
            warped = differentiable_warping(sf, sp, ref_proj['level3'], depth_sample)
            correlation = group_correlation(warped, rf, G_EVAL)
            view_weight = pixel_view_weight(params['pvw'], correlation)
            vw_list.append(resize_bilinear(view_weight, 2 * H, 2 * W, False))
            correlation_sum = correlation_sum + correlation * view_weight[:, None]
            view_weight_sum = view_weight_sum + view_weight[:, None]
        correlation = correlation_sum / view_weight_sum
        correlation = corrnet(params['corr_conv'][2], correlation)
        view_weights_out = jnp.concatenate(vw_list, axis=1)
        index = expected_index(correlation)
        normalized_depth = index / (num_sample - 1.0)
        depth = depth_unnormalization(normalized_depth, inverse_depth_min, inverse_depth_max)
        depth = resize_bilinear(depth, 2 * H, 2 * W, False)
        return view_weights_out, correlation, depth
    else:
        correlations = []
        for l in range(1, 4):
            correlation_sum = 0.0
            view_weight_sum = 1e-5
            rf = ref_feature[f'level{l}']
            rproj = ref_proj[f'level{l}']
            ds = depth_sample[f'level{l}']
            B, ns, H, W = ds.shape
            if l != 2:
                scale = 2.0 ** (l - 2)
                rf = resize_bilinear(rf, int(rf.shape[2] * scale),
                                     int(rf.shape[3] * scale), False).astype(jnp.bfloat16)
            i = 0
            for sf, sp in zip(src_features[f'level{l}'], src_projs[f'level{l}']):
                warped = differentiable_warping(sf, sp, rproj, ds)
                correlation = group_correlation(warped, rf, G_EVAL)
                vw = view_weights[:, i].reshape(B, 1, 1, H, W)
                i += 1
                correlation_sum = correlation_sum + correlation * vw
                view_weight_sum = view_weight_sum + vw
            correlation = correlation_sum / view_weight_sum
            correlation = corrnet(params['corr_conv'][l - 1], correlation)
            correlations.append(correlation)
        return jnp.concatenate(correlations, axis=1)


def lstm_cell(p, h, c, *x_list):
    pieces = [h.astype(jnp.bfloat16)] + [v.astype(jnp.bfloat16) for v in x_list]
    hx = jnp.concatenate(pieces, axis=1)
    gates = conv2d(hx, p['w'], p['b'], 1, 1, 1, None, jnp.float32)  # fused i|f|o|g GEMM
    return lstm_fuse(gates, c)


def depth_head_features(params, h):
    x = conv2d(h, params['dh_w0'], None, 1, 2, 2, 'relu')
    x = conv2d(x, params['dh_w1'], None, 1, 0, 1, 'relu')
    return x                                            # (B, 64, H, W) bf16


def depth_predict(params, h):
    # final 1x1 conv (64 -> 256) + softmax + windowed regression fused in Pallas
    feat = depth_head_features(params, h)
    return depth_regress(feat, params['dh_w2'], params['dh_b2'])


def confidence_head(params, h):
    x = conv2d(h, params['ch_w0'], None, 1, 2, 2, 'relu')
    return conv2d(x, params['ch_w1'], params['ch_b1'], 1, 0, 1, None, jnp.float32)


def hidden_init(params, corr):
    x = conv2d(corr, params['hi_w0'], None, 1, 1, 1, 'relu')
    x = conv2d(x, params['hi_w1'], params['hi_b1'], 1, 0, 1, None, jnp.float32)
    B, C, H, W = x.shape
    return jnp.tanh(resize_bilinear(x, 2 * H, 2 * W, False)).astype(jnp.bfloat16)


def conf_init(params, hidden):
    c0 = confidence_head(params, hidden)
    return jax.nn.sigmoid(c0), c0


def update_forward(params, h_list, c_list, normalized_depth, corr, confidence_flag=False):
    h04, h08, h16 = h_list
    c04, c08, c16 = c_list
    motion = jnp.concatenate([normalized_depth, corr], axis=1)
    h16, c16 = lstm_cell(params['lstm16'], h16, c16, avg_pool2x(h08))
    h08, c08 = lstm_cell(params['lstm08'], h08, c08, avg_pool2x(h04),
                         resize_bilinear(h16, h08.shape[2], h08.shape[3], True))
    h04, c04 = lstm_cell(params['lstm04'], h04, c04, motion,
                         resize_bilinear(h08, h04.shape[2], h04.shape[3], True))
    confidence_new_0 = None
    confidence_new = None
    if confidence_flag:
        confidence_new_0 = confidence_head(params, h04)
        confidence_new = jax.nn.sigmoid(confidence_new_0)
    normalized_depth, probability = depth_predict(params, h04)
    return (h04, h08, h16), (c04, c08, c16), normalized_depth, probability, confidence_new, confidence_new_0


def residual_block(p, x):
    stride = p['stride']
    y = conv2d(x, p['w1'], p['b1'], stride, 1, 1, 'relu')
    y = conv2d(y, p['w2'], p['b2'], 1, 1, 1, 'relu')
    if stride != 1:
        x = conv2d(x, p['wd'], p['bd'], stride, 0, 1, None)
    return jax.nn.relu(x + y)


def run_layer(blocks, x):
    for b in blocks:
        x = residual_block(b, x)
    return x


# ----------------------------------------------------------------------------
# IterMVS forward
# ----------------------------------------------------------------------------
def itermvs_forward(params, ref_feature, src_features, ref_proj, src_projs,
                    depth_min, depth_max, extrinsics, intrinsics, imgs, n_views,
                    iteration=1, test=False):
    # keep feature tensors bf16 end-to-end
    ref_feature = {k: v.astype(jnp.bfloat16) for k, v in ref_feature.items()}
    src_features = {k: [v.astype(jnp.bfloat16) for v in lst] for k, lst in src_features.items()}

    depths = {'combine': [], 'probability': [], 'initial': []}
    confidences = []
    depths_upsampled = []
    confidence_upsampled = None

    B, _, height, width = ref_feature['level2'].shape
    uw = conv2d(ref_feature['level2'], params['upsample_w0'], None, 1, 1, 1, 'relu')
    uw = conv2d(uw, params['upsample_w1'], None, 1, 0, 1, None, jnp.float32)
    uw = uw.reshape(B, 1, 9, 4, 4, height, width)
    upsample_weight = jax.nn.softmax(uw, axis=2)

    inverse_depth_min = (1.0 / depth_min).reshape(B, 1, 1, 1)
    inverse_depth_max = (1.0 / depth_max).reshape(B, 1, 1, 1)
    depth_samples = depth_initialization(inverse_depth_min, inverse_depth_max,
                                         height // 2, width // 2, NUM_SAMPLE)

    view_weights, corr, depth = evaluation(params, ref_feature, src_features, ref_proj,
                                           src_projs, depth_samples,
                                           inverse_depth_min, inverse_depth_max)
    if not test:
        depths['initial'].append(depth)

    h04 = hidden_init(params, corr)
    h08 = run_layer(params['layer4'], h04)
    h16 = run_layer(params['layer5'], h08)
    h_list = (h04, h08, h16)
    c_list = (h04, h08, h16)

    normalized_depth, probability = depth_predict(params, h04)
    if not test:
        confidence, confidence_0 = conf_init(params, h04)
        depth = depth_unnormalization(normalized_depth, inverse_depth_min, inverse_depth_max)
        depths['combine'].append(depth)
        depths['probability'].append(probability)
        confidences.append(confidence_0)

    for it in range(iteration):
        samples = {}
        for i in range(1, 4):
            ns = normalized_depth + CORR_INTERVAL[f'level{i}'] * INTERVAL_SCALE
            ns = jnp.clip(ns, 0.0, 1.0)
            samples[f'level{i}'] = depth_unnormalization(ns, inverse_depth_min, inverse_depth_max)
        corr = evaluation(params, ref_feature, src_features, ref_proj, src_projs, samples,
                          view_weights=view_weights)
        if not test:
            h_list, c_list, normalized_depth, probability, confidence, confidence_0 = \
                update_forward(params, h_list, c_list, normalized_depth, corr, confidence_flag=True)
            depth = depth_unnormalization(normalized_depth, inverse_depth_min, inverse_depth_max)
            depths['combine'].append(depth)
            depths['probability'].append(probability)
            confidences.append(confidence_0)
            if it == iteration - 1:
                depth_upsampled = convex_upsample(normalized_depth, upsample_weight)
                depth_upsampled = depth_unnormalization(depth_upsampled, inverse_depth_min,
                                                        inverse_depth_max)
                # TODO(synk): gn_update (HourglassRefinement / FeatureFetcher) not provided; omitted.
                depths_upsampled.append(depth_upsampled)
                confidence_upsampled = resize_bilinear(confidence, 4 * height, 4 * width, False)
        elif it < iteration - 1:
            h_list, c_list, normalized_depth, _, _, _ = \
                update_forward(params, h_list, c_list, normalized_depth, corr, confidence_flag=False)
        else:
            depth = depth_unnormalization(normalized_depth, inverse_depth_min, inverse_depth_max)
            h_list, c_list, normalized_depth, _, confidence, _ = \
                update_forward(params, h_list, c_list, normalized_depth, corr, confidence_flag=True)
            depth_upsampled = convex_upsample(normalized_depth, upsample_weight)
            depth_upsampled = depth_unnormalization(depth_upsampled, inverse_depth_min,
                                                    inverse_depth_max)
            confidence_upsampled = resize_bilinear(confidence, 4 * height, 4 * width, False)

    if test:
        return depth, depth_upsampled, None, confidence, confidence_upsampled
    return depths, depths_upsampled, confidences, confidence_upsampled


# ----------------------------------------------------------------------------
# Deterministic parameter initialization
# ----------------------------------------------------------------------------
_KEY = [jax.random.PRNGKey(0)]


def _nkey():
    _KEY[0], k = jax.random.split(_KEY[0])
    return k


def _conv_w(cout, cin, k):
    fan = cin * k * k
    return jax.random.normal(_nkey(), (cout, cin, k, k), jnp.float32) * (0.5 / float(fan) ** 0.5)


def _bias(c):
    return jax.random.normal(_nkey(), (c,), jnp.float32) * 0.01


def init_params(feature_dim=16, hidden_dim=32):
    p = {}
    p['upsample_w0'] = _conv_w(64, feature_dim, 3)
    p['upsample_w1'] = _conv_w(16 * 9, 64, 1)
    p['pvw'] = {'w0': _conv_w(16, G_EVAL, 3), 'w1': _conv_w(1, 16, 1), 'b1': _bias(1)}
    p['corr_conv'] = []
    for _ in range(3):
        p['corr_conv'].append({
            'conv0': _conv_w(8, G_EVAL, 3), 'conv1': _conv_w(16, 8, 3), 'conv2': _conv_w(32, 16, 3),
            'conv3': jax.random.normal(_nkey(), (32, 16, 3, 3), jnp.float32) * (0.5 / (32 * 9) ** 0.5),
            'conv4': jax.random.normal(_nkey(), (16, 8, 3, 3), jnp.float32) * (0.5 / (16 * 9) ** 0.5),
            'conv5': _conv_w(1, 8, 3), 'conv5_b': _bias(1)})

    def lstm_p(cin):
        # fused gate weights in (i, f, o, g) order along the output-channel axis
        return {'w': _conv_w(4 * hidden_dim, cin, 3), 'b': _bias(4 * hidden_dim)}

    p['lstm04'] = lstm_p(32 + (32 + 11))
    p['lstm08'] = lstm_p(32 + (32 + 32))
    p['lstm16'] = lstm_p(32 + 32)
    p['dh_w0'] = _conv_w(32, hidden_dim, 3)
    p['dh_w1'] = _conv_w(64, 32, 1)
    p['dh_w2'] = _conv_w(OUT_NUM_SAMPLES, 64, 1)
    p['dh_b2'] = _bias(OUT_NUM_SAMPLES)
    p['ch_w0'] = _conv_w(32, hidden_dim, 3)
    p['ch_w1'] = _conv_w(1, 32, 1)
    p['ch_b1'] = _bias(1)
    p['hi_w0'] = _conv_w(64, NUM_SAMPLE, 3)
    p['hi_w1'] = _conv_w(hidden_dim, 64, 1)
    p['hi_b1'] = _bias(hidden_dim)

    def res_block(stride):
        d = {'w1': _conv_w(32, 32, 3), 'b1': _bias(32),
             'w2': _conv_w(32, 32, 3), 'b2': _bias(32), 'stride': stride}
        if stride != 1:
            d['wd'] = _conv_w(32, 32, 1)
            d['bd'] = _bias(32)
        return d

    p['layer4'] = [res_block(2), res_block(1)]
    p['layer5'] = [res_block(2), res_block(1)]
    return p


# ----------------------------------------------------------------------------
# Example run
# ----------------------------------------------------------------------------
if __name__ == "__main__":
    key = jax.random.PRNGKey(0)
    ks = jax.random.split(key, 12)
    B = 1
    H2, W2 = 16, 16                     # level2 resolution
    feat_ch = 16
    sizes = {'level1': (2 * H2, 2 * W2), 'level2': (H2, W2), 'level3': (H2 // 2, W2 // 2)}

    ref_feature = {lvl: jax.random.normal(ks[i], (B, feat_ch, h, w), jnp.float32) * 0.5
                   for i, (lvl, (h, w)) in enumerate(sizes.items())}
    src_features = {lvl: [jax.random.normal(jax.random.fold_in(ks[3 + i], v),
                                            (B, feat_ch, h, w), jnp.float32) * 0.5
                          for v in range(2)]
                    for i, (lvl, (h, w)) in enumerate(sizes.items())}

    def make_K(h, w):
        return jnp.array([[0.9 * w, 0.0, w / 2.0],
                          [0.0, 0.9 * h, h / 2.0],
                          [0.0, 0.0, 1.0]], jnp.float32)

    def make_proj(Kmat, t):
        P = jnp.eye(4, dtype=jnp.float32)
        P = P.at[:3, :3].set(Kmat)                       # R = I
        P = P.at[:3, 3].set(Kmat @ jnp.array(t, jnp.float32))
        return jnp.broadcast_to(P, (B, 4, 4))

    ref_proj, src_projs = {}, {}
    for lvl, (h, w) in sizes.items():
        Kmat = make_K(h, w)
        ref_proj[lvl] = make_proj(Kmat, (0.0, 0.0, 0.0))
        src_projs[lvl] = [make_proj(Kmat, (0.05, 0.0, 0.0)),
                          make_proj(Kmat, (-0.05, 0.02, 0.0))]

    depth_min = jnp.full((B,), 0.5, jnp.float32)
    depth_max = jnp.full((B,), 10.0, jnp.float32)
    extrinsics = jnp.broadcast_to(jnp.eye(4, dtype=jnp.float32), (B, 3, 4, 4))
    intrinsics = jnp.broadcast_to(make_K(4 * H2, 4 * W2), (B, 3, 3, 3))
    imgs = jax.random.normal(ks[9], (B, 3, 3, 4 * H2, 4 * W2), jnp.float32)
    n_views = jnp.array([3], jnp.int32)

    params = init_params(feature_dim=feat_ch, hidden_dim=32)
    out = itermvs_forward(params, ref_feature, src_features, ref_proj, src_projs,
                          depth_min, depth_max, extrinsics, intrinsics, imgs, n_views,
                          iteration=1, test=False)
    jax.tree_util.tree_map(
        lambda a: a.block_until_ready() if isinstance(a, jax.Array) else a, out)
    print("KERNEL_OK")
</pallas_src>

<mosaic_0001>
module attributes {stable_mosaic.version = 11 : i64} {
  func.func @_conv_flat_kernel(%arg0: i32, %arg1: memref<1x1x16x432xbf16, #tpu.memory_space<vmem>>, %arg2: memref<9x64x16xbf16, #tpu.memory_space<vmem>>, %arg3: memref<64x1xf32, #tpu.memory_space<vmem>>, %arg4: memref<1x64x384xbf16, #tpu.memory_space<vmem>>) attributes {dimension_semantics = [#tpu.dimension_semantics<parallel>], iteration_bounds = array<i64: 1>, scalar_prefetch = 0 : i64, scratch_operands = 0 : i64, tpu.core_type = #tpu.core_type<tc>, window_params = [{transform_indices = @transform_0, window_bounds = array<i64: 1, 1, 16, 432>}, {pipeline_mode = #tpu.pipeline_mode<synchronous>, transform_indices = @transform_1, window_bounds = array<i64: 9, 64, 16>}, {pipeline_mode = #tpu.pipeline_mode<synchronous>, transform_indices = @transform_2, window_bounds = array<i64: 64, 1>}, {transform_indices = @transform_3, window_bounds = array<i64: 1, 64, 384>}]} {
    %cst = arith.constant 0.000000e+00 : f32
    %0 = vector.broadcast %cst : f32 to vector<64x384xf32>
    %c0 = arith.constant 0 : index
    %c0_0 = arith.constant 0 : index
    %c0_1 = arith.constant 0 : index
    %c0_2 = arith.constant 0 : index
    %1 = vector.load %arg1[%c0, %c0_0, %c0_1, %c0_2] : memref<1x1x16x432xbf16, #tpu.memory_space<vmem>>, vector<1x1x16x384xbf16>
    %2 = vector.shape_cast %1 : vector<1x1x16x384xbf16> to vector<16x384xbf16>
    %c0_3 = arith.constant 0 : index
    %c0_4 = arith.constant 0 : index
    %c0_5 = arith.constant 0 : index
    %3 = vector.load %arg2[%c0_3, %c0_4, %c0_5] : memref<9x64x16xbf16, #tpu.memory_space<vmem>>, vector<1x64x16xbf16>
    %4 = vector.shape_cast %3 : vector<1x64x16xbf16> to vector<64x16xbf16>
    %cst_6 = arith.constant dense<0.000000e+00> : vector<64x384xf32>
    %5 = tpu.matmul %4, %2, %cst_6 {dimension_numbers = #tpu.dot_dimension_numbers<[1], [0], [0], [1], [0, 0, 1, 1], [], []>} : vector<64x16xbf16>, vector<16x384xbf16>, vector<64x384xf32> -> vector<64x384xf32>
    %6 = arith.addf %0, %5 : vector<64x384xf32>
    %c0_7 = arith.constant 0 : index
    %c0_8 = arith.constant 0 : index
    %c0_9 = arith.constant 0 : index
    %c1 = arith.constant 1 : index
    %7 = vector.load %arg1[%c0_7, %c0_8, %c0_9, %c1] : memref<1x1x16x432xbf16, #tpu.memory_space<vmem>>, vector<1x1x16x384xbf16>
    %8 = vector.shape_cast %7 : vector<1x1x16x384xbf16> to vector<16x384xbf16>
    %c1_10 = arith.constant 1 : index
    %c0_11 = arith.constant 0 : index
    %c0_12 = arith.constant 0 : index
    %9 = vector.load %arg2[%c1_10, %c0_11, %c0_12] : memref<9x64x16xbf16, #tpu.memory_space<vmem>>, vector<1x64x16xbf16>
    %10 = vector.shape_cast %9 : vector<1x64x16xbf16> to vector<64x16xbf16>
    %cst_13 = arith.constant dense<0.000000e+00> : vector<64x384xf32>
    %11 = tpu.matmul %10, %8, %cst_13 {dimension_numbers = #tpu.dot_dimension_numbers<[1], [0], [0], [1], [0, 0, 1, 1], [], []>} : vector<64x16xbf16>, vector<16x384xbf16>, vector<64x384xf32> -> vector<64x384xf32>
    %12 = arith.addf %6, %11 : vector<64x384xf32>
    %c0_14 = arith.constant 0 : index
    %c0_15 = arith.constant 0 : index
    %c0_16 = arith.constant 0 : index
    %c2 = arith.constant 2 : index
    %13 = vector.load %arg1[%c0_14, %c0_15, %c0_16, %c2] : memref<1x1x16x432xbf16, #tpu.memory_space<vmem>>, vector<1x1x16x384xbf16>
    %14 = vector.shape_cast %13 : vector<1x1x16x384xbf16> to vector<16x384xbf16>
    %c2_17 = arith.constant 2 : index
    %c0_18 = arith.constant 0 : index
    %c0_19 = arith.constant 0 : index
    %15 = vector.load %arg2[%c2_17, %c0_18, %c0_19] : memref<9x64x16xbf16, #tpu.memory_space<vmem>>, vector<1x64x16xbf16>
    %16 = vector.shape_cast %15 : vector<1x64x16xbf16> to vector<64x16xbf16>
    %cst_20 = arith.constant dense<0.000000e+00> : vector<64x384xf32>
    %17 = tpu.matmul %16, %14, %cst_20 {dimension_numbers = #tpu.dot_dimension_numbers<[1], [0], [0], [1], [0, 0, 1, 1], [], []>} : vector<64x16xbf16>, vector<16x384xbf16>, vector<64x384xf32> -> vector<64x384xf32>
    %18 = arith.addf %12, %17 : vector<64x384xf32>
    %c0_21 = arith.constant 0 : index
    %c0_22 = arith.constant 0 : index
    %c0_23 = arith.constant 0 : index
    %c18 = arith.constant 18 : index
    %19 = vector.load %arg1[%c0_21, %c0_22, %c0_23, %c18] : memref<1x1x16x432xbf16, #tpu.memory_space<vmem>>, vector<1x1x16x384xbf16>
    %20 = vector.shape_cast %19 : vector<1x1x16x384xbf16> to vector<16x384xbf16>
    %c3 = arith.constant 3 : index
    %c0_24 = arith.constant 0 : index
    %c0_25 = arith.constant 0 : index
    %21 = vector.load %arg2[%c3, %c0_24, %c0_25] : memref<9x64x16xbf16, #tpu.memory_space<vmem>>, vector<1x64x16xbf16>
    %22 = vector.shape_cast %21 : vector<1x64x16xbf16> to vector<64x16xbf16>
    %cst_26 = arith.constant dense<0.000000e+00> : vector<64x384xf32>
    %23 = tpu.matmul %22, %20, %cst_26 {dimension_numbers = #tpu.dot_dimension_numbers<[1], [0], [0], [1], [0, 0, 1, 1], [], []>} : vector<64x16xbf16>, vector<16x384xbf16>, vector<64x384xf32> -> vector<64x384xf32>
    %24 = arith.addf %18, %23 : vector<64x384xf32>
    %c0_27 = arith.constant 0 : index
    %c0_28 = arith.constant 0 : index
    %c0_29 = arith.constant 0 : index
    %c19 = arith.constant 19 : index
    %25 = vector.load %arg1[%c0_27, %c0_28, %c0_29, %c19] : memref<1x1x16x432xbf16, #tpu.memory_space<vmem>>, vector<1x1x16x384xbf16>
    %26 = vector.shape_cast %25 : vector<1x1x16x384xbf16> to vector<16x384xbf16>
    %c4 = arith.constant 4 : index
    %c0_30 = arith.constant 0 : index
    %c0_31 = arith.constant 0 : index
    %27 = vector.load %arg2[%c4, %c0_30, %c0_31] : memref<9x64x16xbf16, #tpu.memory_space<vmem>>, vector<1x64x16xbf16>
    %28 = vector.shape_cast %27 : vector<1x64x16xbf16> to vector<64x16xbf16>
    %cst_32 = arith.constant dense<0.000000e+00> : vector<64x384xf32>
    %29 = tpu.matmul %28, %26, %cst_32 {dimension_numbers = #tpu.dot_dimension_numbers<[1], [0], [0], [1], [0, 0, 1, 1], [], []>} : vector<64x16xbf16>, vector<16x384xbf16>, vector<64x384xf32> -> vector<64x384xf32>
    %30 = arith.addf %24, %29 : vector<64x384xf32>
    %c0_33 = arith.constant 0 : index
    %c0_34 = arith.constant 0 : index
    %c0_35 = arith.constant 0 : index
    %c20 = arith.constant 20 : index
    %31 = vector.load %arg1[%c0_33, %c0_34, %c0_35, %c20] : memref<1x1x16x432xbf16, #tpu.memory_space<vmem>>, vector<1x1x16x384xbf16>
    %32 = vector.shape_cast %31 : vector<1x1x16x384xbf16> to vector<16x384xbf16>
    %c5 = arith.constant 5 : index
    %c0_36 = arith.constant 0 : index
    %c0_37 = arith.constant 0 : index
    %33 = vector.load %arg2[%c5, %c0_36, %c0_37] : memref<9x64x16xbf16, #tpu.memory_space<vmem>>, vector<1x64x16xbf16>
    %34 = vector.shape_cast %33 : vector<1x64x16xbf16> to vector<64x16xbf16>
    %cst_38 = arith.constant dense<0.000000e+00> : vector<64x384xf32>
    %35 = tpu.matmul %34, %32, %cst_38 {dimension_numbers = #tpu.dot_dimension_numbers<[1], [0], [0], [1], [0, 0, 1, 1], [], []>} : vector<64x16xbf16>, vector<16x384xbf16>, vector<64x384xf32> -> vector<64x384xf32>
    %36 = arith.addf %30, %35 : vector<64x384xf32>
    %c0_39 = arith.constant 0 : index
    %c0_40 = arith.constant 0 : index
    %c0_41 = arith.constant 0 : index
    %c36 = arith.constant 36 : index
    %37 = vector.load %arg1[%c0_39, %c0_40, %c0_41, %c36] : memref<1x1x16x432xbf16, #tpu.memory_space<vmem>>, vector<1x1x16x384xbf16>
    %38 = vector.shape_cast %37 : vector<1x1x16x384xbf16> to vector<16x384xbf16>
    %c6 = arith.constant 6 : index
    %c0_42 = arith.constant 0 : index
    %c0_43 = arith.constant 0 : index
    %39 = vector.load %arg2[%c6, %c0_42, %c0_43] : memref<9x64x16xbf16, #tpu.memory_space<vmem>>, vector<1x64x16xbf16>
    %40 = vector.shape_cast %39 : vector<1x64x16xbf16> to vector<64x16xbf16>
    %cst_44 = arith.constant dense<0.000000e+00> : vector<64x384xf32>
    %41 = tpu.matmul %40, %38, %cst_44 {dimension_numbers = #tpu.dot_dimension_numbers<[1], [0], [0], [1], [0, 0, 1, 1], [], []>} : vector<64x16xbf16>, vector<16x384xbf16>, vector<64x384xf32> -> vector<64x384xf32>
    %42 = arith.addf %36, %41 : vector<64x384xf32>
    %c0_45 = arith.constant 0 : index
    %c0_46 = arith.constant 0 : index
    %c0_47 = arith.constant 0 : index
    %c37 = arith.constant 37 : index
    %43 = vector.load %arg1[%c0_45, %c0_46, %c0_47, %c37] : memref<1x1x16x432xbf16, #tpu.memory_space<vmem>>, vector<1x1x16x384xbf16>
    %44 = vector.shape_cast %43 : vector<1x1x16x384xbf16> to vector<16x384xbf16>
    %c7 = arith.constant 7 : index
    %c0_48 = arith.constant 0 : index
    %c0_49 = arith.constant 0 : index
    %45 = vector.load %arg2[%c7, %c0_48, %c0_49] : memref<9x64x16xbf16, #tpu.memory_space<vmem>>, vector<1x64x16xbf16>
    %46 = vector.shape_cast %45 : vector<1x64x16xbf16> to vector<64x16xbf16>
    %cst_50 = arith.constant dense<0.000000e+00> : vector<64x384xf32>
    %47 = tpu.matmul %46, %44, %cst_50 {dimension_numbers = #tpu.dot_dimension_numbers<[1], [0], [0], [1], [0, 0, 1, 1], [], []>} : vector<64x16xbf16>, vector<16x384xbf16>, vector<64x384xf32> -> vector<64x384xf32>
    %48 = arith.addf %42, %47 : vector<64x384xf32>
    %c0_51 = arith.constant 0 : index
    %c0_52 = arith.constant 0 : index
    %c0_53 = arith.constant 0 : index
    %c38 = arith.constant 38 : index
    %49 = vector.load %arg1[%c0_51, %c0_52, %c0_53, %c38] : memref<1x1x16x432xbf16, #tpu.memory_space<vmem>>, vector<1x1x16x384xbf16>
    %50 = vector.shape_cast %49 : vector<1x1x16x384xbf16> to vector<16x384xbf16>
    %c8 = arith.constant 8 : index
    %c0_54 = arith.constant 0 : index
    %c0_55 = arith.constant 0 : index
    %51 = vector.load %arg2[%c8, %c0_54, %c0_55] : memref<9x64x16xbf16, #tpu.memory_space<vmem>>, vector<1x64x16xbf16>
    %52 = vector.shape_cast %51 : vector<1x64x16xbf16> to vector<64x16xbf16>
    %cst_56 = arith.constant dense<0.000000e+00> : vector<64x384xf32>
    %53 = tpu.matmul %52, %50, %cst_56 {dimension_numbers = #tpu.dot_dimension_numbers<[1], [0], [0], [1], [0, 0, 1, 1], [], []>} : vector<64x16xbf16>, vector<16x384xbf16>, vector<64x384xf32> -> vector<64x384xf32>
    %54 = arith.addf %48, %53 : vector<64x384xf32>
    %c0_57 = arith.constant 0 : index
    %c0_58 = arith.constant 0 : index
    %55 = vector.load %arg3[%c0_57, %c0_58] : memref<64x1xf32, #tpu.memory_space<vmem>>, vector<64x1xf32>
    %56 = vector.broadcast %55 : vector<64x1xf32> to vector<64x384xf32>
    %57 = arith.addf %54, %56 : vector<64x384xf32>
    %cst_59 = arith.constant 0.000000e+00 : f32
    %58 = vector.broadcast %cst_59 : f32 to vector<64x384xf32>
    %59 = arith.maximumf %57, %58 : vector<64x384xf32>
    %60 = arith.truncf %59 : vector<64x384xf32> to vector<64x384xbf16>
    %c0_60 = arith.constant 0 : index
    %c0_61 = arith.constant 0 : index
    %c0_62 = arith.constant 0 : index
    %61 = vector.load %arg4[%c0_60, %c0_61, %c0_62] : memref<1x64x384xbf16, #tpu.memory_space<vmem>>, vector<1x64x384xbf16>
    %62 = vector.shape_cast %61 : vector<1x64x384xbf16> to vector<64x384xbf16>
    %63 = vector.shape_cast %60 : vector<64x384xbf16> to vector<1x64x384xbf16>
    tpu.vector_store %arg4[%c0_60, %c0_61, %c0_62], %63 {strides = array<i32>} : memref<1x64x384xbf16, #tpu.memory_space<vmem>>, vector<1x64x384xbf16>,
    return
  }
  func.func @transform_0(%arg0: i32) -> (i32, i32, i32, i32) {
    %c0_i32 = arith.constant 0 : i32
    %c0_i32_0 = arith.constant 0 : i32
    %c0_i32_1 = arith.constant 0 : i32
    %c0_i32_2 = arith.constant 0 : i32
    return %arg0, %c0_i32, %c0_i32_0, %c0_i32_1 : i32, i32, i32, i32
  }
  func.func @transform_1(%arg0: i32) -> (i32, i32, i32) {
    %c0_i32 = arith.constant 0 : i32
    %c0_i32_0 = arith.constant 0 : i32
    %c0_i32_1 = arith.constant 0 : i32
    %c0_i32_2 = arith.constant 0 : i32
    return %c0_i32, %c0_i32_0, %c0_i32_1 : i32, i32, i32
  }
  func.func @transform_2(%arg0: i32) -> (i32, i32) {
    %c0_i32 = arith.constant 0 : i32
    %c0_i32_0 = arith.constant 0 : i32
    %c0_i32_1 = arith.constant 0 : i32
    return %c0_i32, %c0_i32_0 : i32, i32
  }
  func.func @transform_3(%arg0: i32) -> (i32, i32, i32) {
    %c0_i32 = arith.constant 0 : i32
    %c0_i32_0 = arith.constant 0 : i32
    %c0_i32_1 = arith.constant 0 : i32
    return %arg0, %c0_i32, %c0_i32_0 : i32, i32, i32
  }
}

</mosaic_0001>

<bundles_post_ra>
// kernel: conv2d.1
= control target key start
LH: loop header
LB: loop body
LE: loop exit
PB: predicated region body
PF: predicated region fallthrough
CT: control target
= control target key end

     0   :  { %8 = vsyncpa [#allocation3], 0  ;;  %s3202_s0 = inlined_call_operand.hbm [shape: bf16[1,1,16,432], index: 0, kind: input, shape index: {}]   ;;  %s3203_s1 = inlined_call_operand.hbm [shape: bf16[9,64,16], index: 1, kind: input, shape index: {}]   ;;  %s3204_s2 = inlined_call_operand.hbm [shape: f32[64,1], index: 2, kind: input, shape index: {}]   ;;  %s3205_s3 = inlined_call_operand.hbm [shape: bf16[1,64,384], index: 3, kind: output, shape index: {}]  }
   0x1   :  { %9 = vsyncpa [#allocation6], 0 }
   0x2   :  { %10 = vsyncpa [#allocation4], 0  ;;  %s2830_s12 = smov [#allocation5]   ;;  %s2736_s16 = scalar_lea.hbm %s3203_s1, 4608 }
   0x3   :  { %s28_s13 = sshll.u32 %s2830_s12, 4  ;;  %p2737_p0 = scmp.ne.s32.totalorder %s3203_s1, %s2736_s16  ;;  %s29_s13 = int_to_ptr.vmem [resolvable:$true] %s28_s13 }
   0x4   :  { %p2740_p1 = scmp.lt.u32.totalorder %s2736_s16, %s3203_s1 }
   0x6   :  { %p2742_p2 = pnand %p2740_p1, %p2737_p0 }
   0x8   :  { %2745 = shalt.err (!%p2742_p2)
}
   0x9   :  { %s2746_s21 = scalar_lea.vmem %s29_s13, 4608  ;;  %p2751_p4 = scmp.lt.s32.totalorder %s29_s13, %s29_s13 }
   0xa   :  { %p2747_p3 = scmp.ne.s32.totalorder %s29_s13, %s2746_s21  ;;  %p2752_p5 = scmp.lt.s32.totalorder %s2746_s21, %s2746_s21 }
   0xc   :  { %p2753_p6 = por %p2752_p5, %p2751_p4 }
   0xe   :  { %p2754_p7 = pnand %p2753_p6, %p2747_p3 }
  0x10   :  { %2757 = shalt.err (!%p2754_p7)
}
  0x11   :  { %s2831_s22 = smov 64   ;;  %s2832_s23 = smov 4  }
  0x12   :  { %34 = dma.hbm_to_vmem [thread:$0]  %s3203_s1, 4608, %s29_s13, [#allocation6], %s2831_s22, %s2831_s22, %s2832_s23  }
  0x13   :  { %s2833_s26 = smov [#allocation2]   ;;  %s2758_s30 = scalar_lea.hbm %s3202_s0, 512 }
  0x14   :  { %s16_s27 = sshll.u32 %s2833_s26, 4  ;;  %p2759_p8 = scmp.ne.s32.totalorder %s3202_s0, %s2758_s30  ;;  %s17_s27 = int_to_ptr.vmem [resolvable:$true] %s16_s27 }
  0x15   :  { %p2762_p9 = scmp.lt.u32.totalorder %s2758_s30, %s3202_s0 }
  0x17   :  { %p2764_p10 = pnand %p2762_p9, %p2759_p8 }
  0x19   :  { %2767 = shalt.err (!%p2764_p10)
}
  0x1a   :  { %s2768_s8 = scalar_lea.vmem %s17_s27, 512  ;;  %p2773_p12 = scmp.lt.s32.totalorder %s17_s27, %s17_s27 }
  0x1b   :  { %p2769_p11 = scmp.ne.s32.totalorder %s17_s27, %s2768_s8  ;;  %p2774_p13 = scmp.lt.s32.totalorder %s2768_s8, %s2768_s8 }
  0x1d   :  { %p2775_p0 = por %p2774_p13, %p2773_p12 }
  0x1f   :  { %p2776_p1 = pnand %p2775_p0, %p2769_p11 }
  0x21   :  { %2779 = shalt.err (!%p2776_p1)
}
  0x22   :  { %s2834_s1 = smov 256   ;;  %s2835_s9 = smov 16  }
  0x23   :  { %22 = dma.hbm_to_vmem [thread:$0]  %s3202_s0, 512, %s17_s27, [#allocation3], %s2834_s1, %s2834_s1, %s2835_s9  }
  0x24   :  { %s2836_s12 = smov [#allocation7]   ;;  %s2780_s16 = scalar_lea.hbm %s3204_s2, 1024 }
  0x25   :  { %s40_s13 = sshll.u32 %s2836_s12, 4  ;;  %p2781_p2 = scmp.ne.s32.totalorder %s3204_s2, %s2780_s16  ;;  %s41_s13 = int_to_ptr.vmem [resolvable:$true] %s40_s13 }
  0x26   :  { %p2784_p3 = scmp.lt.u32.totalorder %s2780_s16, %s3204_s2 }
  0x28   :  { %p2786_p4 = pnand %p2784_p3, %p2781_p2 }
  0x2a   :  { %2789 = shalt.err (!%p2786_p4)
}
  0x2b   :  { %s2790_s21 = scalar_lea.vmem %s41_s13, 1024  ;;  %p2795_p6 = scmp.lt.s32.totalorder %s41_s13, %s41_s13 }
  0x2c   :  { %p2791_p5 = scmp.ne.s32.totalorder %s41_s13, %s2790_s21  ;;  %p2796_p7 = scmp.lt.s32.totalorder %s2790_s21, %s2790_s21 }
  0x2e   :  { %p2797_p8 = por %p2796_p7, %p2795_p6 }
  0x30   :  { %p2798_p9 = pnand %p2797_p8, %p2791_p5 }
  0x32   :  { %2801 = shalt.err (!%p2798_p9)
}
  0x33   :  { %s2837_s0 = smov 128   ;;  %s2838_s22 = smov 8  }
  0x34   :  { %46 = dma.hbm_to_vmem [thread:$0]  %s3204_s2, 1024, %s41_s13, [#allocation6], %s2837_s0, %s2837_s0, %s2838_s22  }
  0x35   :  { %2824 = dma.done.wait [#allocation3], 512  }
  0x36   :  { %2825 = vsyncadd [#allocation3], 4294966784 }
  0x37   :  { %2826 = dma.done.wait [#allocation6], 5632  }
  0x38   :  { %2827 = vsyncadd [#allocation6], 4294961664  ;;  %v2839_v0 = vmov 0   ;;  %v2911_v1 = vld [vmem:[#allocation2 + $0x4] ss:$16 sps:$4 sm:$0xff]   ;;  %s2840_s25 = smov 126  }
  0x39   :  { %548 = vmatprep.mubr.bf16.mxu0 %v2839_v0  ;;  %176 = vmatprep.mubr.bf16.mxu1 %v2839_v0  ;;  %v2913_v2 = vld [vmem:[#allocation2] ss:$16 sps:$4 sm:$0xff]   ;;  %v2696_v3 = vld [vmem:[#allocation2 + $0x8] ss:$16 sps:$4 sm:$0xff]   ;;  %s2841_s2 = smov 127   ;;  %s2842_s26 = smov 110  }
  0x3a   :  { %2691 = vset.pattern.permute.xlu0 %v2839_v0  ;;  %2692 = vset.pattern.permute.xlu1 %v2839_v0  ;;  %v2698_v4 = vld [vmem:[#allocation2 + $0xc] ss:$16 sps:$4 sm:$0xff]   ;;  %s2843_s27 = smov 109   ;;  %s2844_s28 = smov 108   ;;  %vm497_vm0 = vcmask 1031168   ;;  %vm124_vm1 = vcmask 1039360  }
  0x3b   :  { %491 = vrot.lane.b32.xlu0 %v2911_v1, %s2840_s25  ;;  %489 = vrot.lane.b32.xlu1 %v2913_v2, %s2840_s25  ;;  %s2845_s29 = smov 92   ;;  %s2846_s30 = smov 91   ;;  %v2938_v11 = vld [vmem:[#allocation5 + $0x40] sm:$0xff]   ;;  %vm131_vm2 = vcmask 130048   ;;  %vm715_vm3 = vcmask 900096   ;;  %v2948_v20 = vld [vmem:[#allocation5 + $0x48] sm:$0xff]  }
  0x3c   :  { %s2847_s4 = smov 90   ;;  %v2700_v16 = vld [vmem:[#allocation5 + $0x20] sm:$0xff]   ;;  %v2702_v25 = vld [vmem:[#allocation5 + $0x28] sm:$0xff]   ;;  %vm933_vm4 = vcmask 891904   ;;  %v2958_v28 = vld [vmem:[#allocation5 + $0x50] sm:$0xff]   ;;  %vm1151_vm5 = vcmask 883712  }
  0x3d   :  { %v2704_v32 = vld [vmem:[#allocation5 + $0x30] sm:$0xff]   ;;  %v2966_v35 = vld [vmem:[#allocation5 + $0x60] sm:$0xff]   ;;  %v2706_v41 = vld [vmem:[#allocation5 + $0x38] sm:$0xff]   ;;  %vm1369_vm6 = vcmask 752640   ;;  %vm1587_vm7 = vcmask 744448   ;;  %vm1805_vm8 = vcmask 736256  }
  0x3e   :  { %v2982_v44 = vld [vmem:[#allocation5 + $0x68] sm:$0xff]   ;;  %v2997_v52 = vld [vmem:[#allocation5 + $0x70] sm:$0xff]   ;;  %v3013_v58 = vld [vmem:[#allocation5 + $0x78] sm:$0xff]   ;;  %s2848_s5 = smov [#allocation8]  }
  0x3f   :  { %493 = vrot.lane.b32.xlu0 %v2696_v3, %s2840_s25  ;;  %118 = vrot.lane.b32.xlu1 %v2911_v1, %s2841_s2  ;;  %v2710_v49 = vld [vmem:[#allocation2 + $0x8] ss:$16 sps:$4 sm:$0xff]   ;;  %v2711_v60 = vld [vmem:[#allocation5] sm:$0xff]   ;;  %s2183_s6 = sshll.u32 %s2848_s5, 4  ;;  %s2184_s6 = int_to_ptr.vmem [resolvable:$true] %s2183_s6 }
  0x40   :  { %v3025_v63 = vld [vmem:[#allocation5 + $0x80] sm:$0xff]   ;;  %s2802_s7 = scalar_lea.vmem %s2184_s6, 1536  ;;  %p2807_p11 = scmp.lt.s32.totalorder %s2184_s6, %s2184_s6 }
  0x41   :  { %p2803_p10 = scmp.ne.s32.totalorder %s2184_s6, %s2802_s7  ;;  %p2808_p12 = scmp.lt.s32.totalorder %s2802_s7, %s2802_s7 }
  0x43   :  { %120 = vrot.lane.b32.xlu0 %v2696_v3, %s2841_s2  ;;  %116 = vrot.lane.b32.xlu1 %v2913_v2, %s2841_s2  ;;  %p2809_p13 = por %p2808_p12, %p2807_p11 }
  0x45   :  { %p2810_p0 = pnand %p2809_p13, %p2803_p10 }
  0x47   :  { %709 = vrot.lane.b32.xlu0 %v2911_v1, %s2842_s26  ;;  %711 = vrot.lane.b32.xlu1 %v2696_v3, %s2842_s26 }
  0x4b   :  { %707 = vrot.lane.b32.xlu0 %v2913_v2, %s2842_s26  ;;  %122 = vrot.lane.b32.xlu1 %v2698_v4, %s2841_s2 }
  0x4f   :  { %927 = vrot.lane.b32.xlu0 %v2911_v1, %s2843_s27  ;;  %929 = vrot.lane.b32.xlu1 %v2696_v3, %s2843_s27 }
  0x53   :  { %925 = vrot.lane.b32.xlu0 %v2913_v2, %s2843_s27  ;;  %1145 = vrot.lane.b32.xlu1 %v2911_v1, %s2844_s28 }
  0x57   :  { %1147 = vrot.lane.b32.xlu0 %v2696_v3, %s2844_s28  ;;  %1143 = vrot.lane.b32.xlu1 %v2913_v2, %s2844_s28 }
  0x5b   :  { %495 = vrot.lane.b32.xlu0 %v2698_v4, %s2840_s25  ;;  %1363 = vrot.lane.b32.xlu1 %v2911_v1, %s2845_s29 }
  0x5f   :  { %1365 = vrot.lane.b32.xlu0 %v2696_v3, %s2845_s29  ;;  %1361 = vrot.lane.b32.xlu1 %v2913_v2, %s2845_s29 }
  0x63   :  { %713 = vrot.lane.b32.xlu0 %v2698_v4, %s2842_s26  ;;  %931 = vrot.lane.b32.xlu1 %v2698_v4, %s2843_s27 }
  0x67   :  { %1581 = vrot.lane.b32.xlu0 %v2911_v1, %s2846_s30  ;;  %1583 = vrot.lane.b32.xlu1 %v2696_v3, %s2846_s30 }
  0x6b   :  { %1579 = vrot.lane.b32.xlu0 %v2913_v2, %s2846_s30  ;;  %1149 = vrot.lane.b32.xlu1 %v2698_v4, %s2844_s28 }
  0x6f   :  { %1367 = vrot.lane.b32.xlu0 %v2698_v4, %s2845_s29  ;;  %1799 = vrot.lane.b32.xlu1 %v2911_v1, %s2847_s4 }
  0x73   :  { %1801 = vrot.lane.b32.xlu0 %v2696_v3, %s2847_s4  ;;  %1797 = vrot.lane.b32.xlu1 %v2913_v2, %s2847_s4  ;;  %v2713_v3 = vld [vmem:[#allocation5 + $0x8] sm:$0xff]  }
  0x77   :  { %1585 = vrot.lane.b32.xlu0 %v2698_v4, %s2846_s30  ;;  %1803 = vrot.lane.b32.xlu1 %v2698_v4, %s2847_s4  ;;  %v3036_v4 = vld [vmem:[#allocation5 + $0x88] sm:$0xff]  }
  0xad   :  { %v492_v5 = vpop.permute.xlu0 %491  ;;  %v490_v6 = vpop.permute.xlu1 %489 }
  0xae   :  { %v2936_v10 = vsel %vm497_vm0, %v490_v6, %v492_v5  ;;  %v3043_v6 = vld [vmem:[#allocation5 + $0x90] sm:$0xff]  }
  0xb1   :  { %v494_v7 = vpop.permute.xlu0 %493  ;;  %v119_v8 = vpop.permute.xlu1 %118 }
  0xb2   :  { %v2932_v9 = vsel %vm497_vm0, %v492_v5, %v494_v7  ;;  %v2715_v5 = vld [vmem:[#allocation5 + $0x10] sm:$0xff]  }
  0xb3   :  { %516 = vmatprep.subr.bf16.mxu0 %v2932_v9 }
  0xb4   :  { %517 = vmatpush1.bf16.msra.mxu0 %v2936_v10 }
  0xb5   :  { %v121_v12 = vpop.permute.xlu0 %120  ;;  %v117_v13 = vpop.permute.xlu1 %116 }
  0xb6   :  { %v126_v14 = vsel %vm124_vm1, %v119_v8, %v121_v12  ;;  %v125_v15 = vsel %vm124_vm1, %v117_v13, %v119_v8  ;;  %v3050_v8 = vld [vmem:[#allocation5 + $0x98] sm:$0xff]  }
  0xb7   :  { %144 = vmatprep.subr.bf16.mxu1 %v126_v14  ;;  %2229 = vmatmul.mubr.msk.bf16.vlgmr.msra.gmra.mrb[0].mxu0 %vm131_vm2, %v2938_v11  ;;  %v2721_v14 = vld [vmem:[#allocation5 + $0x58] sm:$0xff]  }
  0xb8   :  { %145 = vmatpush1.bf16.msra.mxu1 %v125_v15  ;;  %558 = vmatprep.mubr.bf16.mxu0 %v2839_v0  ;;  %v3078_v15 = vld [vmem:[#allocation5 + $0xb0] sm:$0xff]  }
  0xb9   :  { %v710_v17 = vpop.permute.xlu0 %709  ;;  %v712_v18 = vpop.permute.xlu1 %711 }
  0xba   :  { %v717_v19 = vsel %vm715_vm3, %v710_v17, %v712_v18 }
  0xbb   :  { %2204 = vmatmul.mubr.msk.bf16.vlgmr.msra.gmra.mrb[0].mxu1 %vm131_vm2, %v2700_v16  ;;  %734 = vmatprep.subr.bf16.mxu0 %v717_v19 }
  0xbc   :  { %186 = vmatprep.mubr.bf16.mxu1 %v2839_v0 }
  0xbd   :  { %v708_v21 = vpop.permute.xlu0 %707  ;;  %v123_v23 = vpop.permute.xlu1 %122 }
  0xbe   :  { %v716_v22 = vsel %vm715_vm3, %v708_v21, %v710_v17  ;;  %v127_v24 = vsel %vm124_vm1, %v121_v12, %v123_v23  ;;  %v2726_v21 = vld [vmem:[#allocation5 + $0xd0] sm:$0xff]   ;;  %v2727_v23 = vld [vmem:[#allocation5 + $0xd8] sm:$0xff]  }
  0xbf   :  { %2230 = vmatmul.mubr.msk.bf16.gmra.mrb[4].mxu0 %vm131_vm2, %v2948_v20  ;;  %2386 = vmatprep.subr.bf16.mxu1 %v127_v24 }
  0xc0   :  { %735 = vmatpush1.bf16.msra.mxu0 %v716_v22  ;;  %2387 = vmatpush3.bf16.msra.mxu1 %v127_v24  ;;  %v1986_v22 = vld [vmem:[#allocation7] sm:$0xff]  ;;  %v1987_v24 = vld [vmem:[#allocation7 + $0x8] sm:$0xff] }
  0xc1   :  { %v928_v26 = vpop.permute.xlu0 %927  ;;  %568 = vmatprep.mubr.bf16.mxu0 %v2839_v0  ;;  %v930_v27 = vpop.permute.xlu1 %929  ;;  %322 = vmatprep.subr.bf16.mxu1 %v2911_v1 }
  0xc2   :  { %v935_v29 = vsel %vm933_vm4, %v928_v26, %v930_v27  ;;  %1996 = vperm.xlu0 %2691, %v1986_v22   ;;  %2001 = vperm.xlu1 %2692, %v1987_v24  }
  0xc3   :  { %2205 = vmatmul.mubr.msk.bf16.gmra.mrb[4].mxu1 %vm131_vm2, %v2702_v25  ;;  %952 = vmatprep.subr.bf16.mxu0 %v935_v29  ;;  %v1989_v29 = vld [vmem:[#allocation7 + $0x18] sm:$0xff] }
  0xc4   :  { %196 = vmatprep.mubr.bf16.mxu1 %v2839_v0 }
  0xc5   :  { %v926_v30 = vpop.permute.xlu0 %925  ;;  %v1146_v31 = vpop.permute.xlu1 %1145 }
  0xc6   :  { %v934_v36 = vsel %vm933_vm4, %v926_v30, %v928_v26  ;;  %v2728_v26 = vld [vmem:[#allocation5 + $0xe0] sm:$0xff]   ;;  %2011 = vperm.xlu0 %2691, %v1989_v29  }
  0xc7   :  { %2231 = vmatmul.mubr.msk.bf16.gmra.mrb[8].mxu0 %vm131_vm2, %v2958_v28  ;;  %v1990_v30 = vld [vmem:[#allocation7 + $0x20] sm:$0xff] }
  0xc8   :  { %766 = vmatprep.mubr.bf16.mxu0 %v2839_v0 }
  0xc9   :  { %v1148_v33 = vpop.permute.xlu0 %1147  ;;  %v1144_v34 = vpop.permute.xlu1 %1143 }
  0xca   :  { %v1153_v39 = vsel %vm1151_vm5, %v1146_v31, %v1148_v33  ;;  %v1152_v1 = vsel %vm1151_vm5, %v1144_v34, %v1146_v31  ;;  %v1991_v31 = vld [vmem:[#allocation7 + $0x28] sm:$0xff]  ;;  %v1993_v34 = vld [vmem:[#allocation7 + $0x38] sm:$0xff] }
  0xcb   :  { %2206 = vmatmul.mubr.msk.bf16.gmra.mrb[8].mxu1 %vm131_vm2, %v2704_v32  ;;  %2021 = vperm.xlu0 %2691, %v1991_v31  }
  0xcc   :  { %206 = vmatprep.mubr.bf16.mxu1 %v2839_v0 }
  0xcd   :  { %v496_v37 = vpop.permute.xlu0 %495  ;;  %v2970_v38 = vpop.permute.xlu1 %1363 }
  0xce   :  { %v2974_v40 = vsel %vm497_vm0, %v494_v7, %v496_v37  ;;  %v2717_v7 = vld [vmem:[#allocation5 + $0x18] sm:$0xff]  }
  0xcf   :  { %2241 = vmatmul.mubr.msk.bf16.vlgmr.msra.gmra.mrb[0].mxu0 %vm131_vm2, %v2966_v35  ;;  %2031 = vperm.xlu0 %2691, %v1993_v34  }
  0xd0   :  { %953 = vmatpush1.bf16.msra.mxu0 %v934_v36  ;;  %776 = vmatprep.mubr.bf16.mxu0 %v2839_v0 }
  0xd1   :  { %v1366_v42 = vpop.permute.xlu0 %1365  ;;  %1170 = vmatprep.subr.bf16.mxu0 %v1153_v39  ;;  %v2979_v43 = vpop.permute.xlu1 %1361  ;;  %v2732_v39 = vld [vmem:[#allocation5 + $0x100] sm:$0xff]  }
  0xd2   :  { %v1370_v12 = vsel %vm1369_vm6, %v2979_v43, %v2970_v38 }
  0xd3   :  { %2207 = vmatmul.mubr.msk.bf16.gmra.mrb[12].mxu1 %vm131_vm2, %v2706_v41 }
  0xd4   :  { %2388 = vmatprep.mubr.msk.bf16.mxu1 %vm131_vm2, %v2700_v16  ;;  %v3089_v16 = vld [vmem:[#allocation5 + $0xb8] sm:$0xff]  }
  0xd5   :  { %v714_v45 = vpop.permute.xlu0 %713  ;;  %v932_v46 = vpop.permute.xlu1 %931 }
  0xd6   :  { %v2986_v47 = vsel %vm715_vm3, %v712_v18, %v714_v45  ;;  %v2991_v48 = vsel %vm933_vm4, %v930_v27, %v932_v46 }
  0xd7   :  { %2242 = vmatmul.mubr.msk.bf16.gmra.mrb[4].mxu0 %vm131_vm2, %v2982_v44 }
  0xd8   :  { %786 = vmatprep.mubr.bf16.mxu0 %v2839_v0 }
  0xd9   :  { %v2994_v50 = vpop.permute.xlu0 %1581  ;;  %v1584_v51 = vpop.permute.xlu1 %1583 }
  0xda   :  { %v1589_v13 = vsel %vm1587_vm7, %v2994_v50, %v1584_v51 }
  0xdb   :  { %2389 = vmatmul.mubr.msk.bf16.vlgmr.msra.gmra.mrb[16].mxu1 %vm131_vm2, %v2702_v25  ;;  %v1988_v25 = vld [vmem:[#allocation7 + $0x10] sm:$0xff] }
  0xdc   :  { %323 = vmatpush1.bf16.msra.mxu1 %v2913_v2  ;;  %2392 = vmatprep.mubr.msk.bf16.mxu1 %vm131_vm2, %v2704_v32  ;;  %v1371_v2 = vsel %vm1369_vm6, %v2970_v38, %v1366_v42  ;;  %v2729_v32 = vld [vmem:[#allocation5 + $0xe8] sm:$0xff]   ;;  %v2731_v38 = vld [vmem:[#allocation5 + $0xf8] sm:$0xff]  }
  0xdd   :  { %2396 = vmatprep.subr.bf16.mxu1 %v2710_v49  ;;  %v3001_v53 = vpop.permute.xlu0 %1579  ;;  %v1150_v54 = vpop.permute.xlu1 %1149  ;;  %2006 = vperm.xlu1 %2692, %v1988_v25  }
  0xde   :  { %v3006_v55 = vsel %vm1151_vm5, %v1148_v33, %v1150_v54  ;;  %v1588_v17 = vsel %vm1587_vm7, %v3001_v53, %v2994_v50  ;;  %v1992_v33 = vld [vmem:[#allocation7 + $0x30] sm:$0xff] }
  0xdf   :  { %2243 = vmatmul.mubr.msk.bf16.gmra.mrb[8].mxu0 %vm131_vm2, %v2997_v52 }
  0xe0   :  { %796 = vmatprep.mubr.bf16.mxu0 %v2839_v0 }
  0xe1   :  { %v1368_v56 = vpop.permute.xlu0 %1367  ;;  %v1800_v18 = vpop.permute.xlu1 %1799  ;;  %2016 = vperm.xlu1 %2692, %v1990_v30  }
  0xe2   :  { %v3010_v57 = vsel %vm1369_vm6, %v1366_v42, %v1368_v56  ;;  %v2735_v42 = vld [vmem:[#allocation5 + $0x118] sm:$0xff]  }
  0xe3   :  { %2393 = vmatmul.mubr.msk.bf16.gmra.mrb[20].mxu1 %vm131_vm2, %v2706_v41  ;;  %v2734_v41 = vld [vmem:[#allocation5 + $0x110] sm:$0xff]  }
  0xe4   :  { %354 = vmatprep.mubr.bf16.mxu1 %v2839_v0 }
  0xe5   :  { %v3016_v59 = vpop.permute.xlu0 %1801  ;;  %v1798_v27 = vpop.permute.xlu1 %1797  ;;  %2026 = vperm.xlu1 %2692, %v1992_v33  }
  0xe6   :  { %v1807_v19 = vsel %vm1805_vm8, %v1800_v18, %v3016_v59 }
  0xe7   :  { %2244 = vmatmul.mubr.msk.bf16.gmra.mrb[12].mxu0 %vm131_vm2, %v3013_v58 }
  0xe8   :  { %984 = vmatprep.mubr.bf16.mxu0 %v2839_v0 }
  0xe9   :  { %v1586_v61 = vpop.permute.xlu0 %1585  ;;  %v1804_v36 = vpop.permute.xlu1 %1803 }
  0xea   :  { %v3022_v62 = vsel %vm1587_vm7, %v1584_v51, %v1586_v61  ;;  %v1808_v37 = vsel %vm1805_vm8, %v3016_v59, %v1804_v36 }
  0xeb   :  { %2217 = vmatmul.mubr.msk.bf16.vlgmr.msra.gmra.mrb[0].mxu1 %vm131_vm2, %v2711_v60 }
  0xec   :  { %2397 = vmatpush3.bf16.msra.mxu1 %v2710_v49  ;;  %364 = vmatprep.mubr.bf16.mxu1 %v2839_v0 }
  0xed   :  { %2476 = vmatprep.subr.bf16.mxu1 %v2932_v9  ;;  %v3057_v9 = vld [vmem:[#allocation5 + $0xa0] sm:$0xff]  }
  0xef   :  { %2253 = vmatmul.mubr.msk.bf16.vlgmr.msra.gmra.mrb[0].mxu0 %vm131_vm2, %v3025_v63 }
  0xf0   :  { %1171 = vmatpush1.bf16.msra.mxu0 %v1152_v1  ;;  %994 = vmatprep.mubr.bf16.mxu0 %v2839_v0 }
  0xf1   :  { %1388 = vmatprep.subr.bf16.mxu0 %v1371_v2 }
  0xf3   :  { %2218 = vmatmul.mubr.msk.bf16.gmra.mrb[4].mxu1 %vm131_vm2, %v2713_v3 }
  0xf4   :  { %374 = vmatprep.mubr.bf16.mxu1 %v2839_v0 }
  0xf7   :  { %2254 = vmatmul.mubr.msk.bf16.gmra.mrb[4].mxu0 %vm131_vm2, %v3036_v4 }
  0xf8   :  { %1004 = vmatprep.mubr.bf16.mxu0 %v2839_v0 }
  0xfb   :  { %2219 = vmatmul.mubr.msk.bf16.gmra.mrb[8].mxu1 %vm131_vm2, %v2715_v5 }
  0xfc   :  { %384 = vmatprep.mubr.bf16.mxu1 %v2839_v0 }
  0xff   :  { %2255 = vmatmul.mubr.msk.bf16.gmra.mrb[8].mxu0 %vm131_vm2, %v3043_v6 }
 0x100   :  { %1014 = vmatprep.mubr.bf16.mxu0 %v2839_v0 }
 0x103   :  { %2220 = vmatmul.mubr.msk.bf16.gmra.mrb[12].mxu1 %vm131_vm2, %v2717_v7 }
 0x104   :  { %2398 = vmatprep.mubr.msk.bf16.mxu1 %vm131_vm2, %v2711_v60 }
 0x107   :  { %2256 = vmatmul.mubr.msk.bf16.gmra.mrb[12].mxu0 %vm131_vm2, %v3050_v8 }
 0x108   :  { %1202 = vmatprep.mubr.bf16.mxu0 %v2839_v0 }
 0x10b   :  { %2399 = vmatmul.mubr.msk.bf16.vlgmr.msra.gmra.mrb[16].mxu1 %vm131_vm2, %v2713_v3 }
 0x10c   :  { %2477 = vmatpush1.bf16.msra.mxu1 %v2936_v10  ;;  %2402 = vmatprep.mubr.msk.bf16.mxu1 %vm131_vm2, %v2715_v5  ;;  %v3071_v10 = vld [vmem:[#allocation5 + $0xa8] sm:$0xff]  }
 0x10d   :  { %2406 = vmatprep.subr.bf16.mxu1 %v2974_v40 }
 0x10f   :  { %2265 = vmatmul.mubr.msk.bf16.vlgmr.msra.gmra.mrb[0].mxu0 %vm131_vm2, %v3057_v9 }
 0x110   :  { %1389 = vmatpush1.bf16.msra.mxu0 %v1370_v12  ;;  %1212 = vmatprep.mubr.bf16.mxu0 %v2839_v0 }
 0x111   :  { %1606 = vmatprep.subr.bf16.mxu0 %v1589_v13 }
 0x113   :  { %2403 = vmatmul.mubr.msk.bf16.gmra.mrb[20].mxu1 %vm131_vm2, %v2717_v7 }
 0x114   :  { %578 = vmatprep.mubr.bf16.mxu1 %v2839_v0 }
 0x117   :  { %2266 = vmatmul.mubr.msk.bf16.gmra.mrb[4].mxu0 %vm131_vm2, %v3071_v10 }
 0x118   :  { %1222 = vmatprep.mubr.bf16.mxu0 %v2839_v0 }
 0x11b   :  { %2232 = vmatmul.mubr.msk.bf16.vlgmr.msra.gmra.mrb[12].mxu1 %vm131_vm2, %v2721_v14 }
 0x11c   :  { %2407 = vmatpush3.bf16.msra.mxu1 %v2974_v40  ;;  %2408 = vmatprep.mubr.msk.bf16.mxu1 %vm131_vm2, %v2938_v11  ;;  %v2724_v11 = vld [vmem:[#allocation5 + $0xc0] sm:$0xff]   ;;  %v2733_v40 = vld [vmem:[#allocation5 + $0x108] sm:$0xff]  }
 0x11d   :  { %2416 = vmatprep.subr.bf16.mxu1 %v2986_v47 }
 0x11f   :  { %2267 = vmatmul.mubr.msk.bf16.gmra.mrb[8].mxu0 %vm131_vm2, %v3078_v15 }
 0x120   :  { %1232 = vmatprep.mubr.bf16.mxu0 %v2839_v0 }
 0x123   :  { %2409 = vmatmul.mubr.msk.bf16.vlgmr.msra.gmra.mrb[16].mxu1 %vm131_vm2, %v2948_v20  ;;  %v2725_v20 = vld [vmem:[#allocation5 + $0xc8] sm:$0xff]  }
 0x124   :  { %2417 = vmatpush3.bf16.msra.mxu1 %v2986_v47  ;;  %2412 = vmatprep.mubr.msk.bf16.mxu1 %vm131_vm2, %v2958_v28  ;;  %v1806_v28 = vsel %vm1805_vm8, %v1798_v27, %v1800_v18 }
 0x125   :  { %2426 = vmatprep.subr.bf16.mxu1 %v2991_v48 }
 0x127   :  { %2268 = vmatmul.mubr.msk.bf16.gmra.mrb[12].mxu0 %vm131_vm2, %v3089_v16 }
 0x128   :  { %1420 = vmatprep.mubr.bf16.mxu0 %v2839_v0 }
 0x12b   :  { %2413 = vmatmul.mubr.msk.bf16.gmra.mrb[20].mxu1 %vm131_vm2, %v2721_v14 }
 0x12c   :  { %2418 = vmatprep.mubr.msk.bf16.mxu1 %vm131_vm2, %v2966_v35  ;;  %v2730_v35 = vld [vmem:[#allocation5 + $0xf0] sm:$0xff]  }
 0x12f   :  { %2277 = vmatmul.mubr.msk.bf16.vlgmr.msra.gmra.mrb[0].mxu0 %vm131_vm2, %v2724_v11 }
 0x130   :  { %1607 = vmatpush1.bf16.msra.mxu0 %v1588_v17  ;;  %1430 = vmatprep.mubr.bf16.mxu0 %v2839_v0 }
 0x131   :  { %1824 = vmatprep.subr.bf16.mxu0 %v1807_v19 }
 0x133   :  { %2419 = vmatmul.mubr.msk.bf16.vlgmr.msra.gmra.mrb[16].mxu1 %vm131_vm2, %v2982_v44 }
 0x134   :  { %2427 = vmatpush3.bf16.msra.mxu1 %v2991_v48  ;;  %2422 = vmatprep.mubr.msk.bf16.mxu1 %vm131_vm2, %v2997_v52 }
 0x135   :  { %2436 = vmatprep.subr.bf16.mxu1 %v3006_v55 }
 0x137   :  { %2278 = vmatmul.mubr.msk.bf16.gmra.mrb[4].mxu0 %vm131_vm2, %v2725_v20 }
 0x138   :  { %1440 = vmatprep.mubr.bf16.mxu0 %v2839_v0 }
 0x13b   :  { %2423 = vmatmul.mubr.msk.bf16.gmra.mrb[20].mxu1 %vm131_vm2, %v3013_v58 }
 0x13c   :  { %2428 = vmatprep.mubr.msk.bf16.mxu1 %vm131_vm2, %v3025_v63 }
 0x13f   :  { %2279 = vmatmul.mubr.msk.bf16.gmra.mrb[8].mxu0 %vm131_vm2, %v2726_v21 }
 0x140   :  { %1450 = vmatprep.mubr.bf16.mxu0 %v2839_v0 }
 0x141   :  { %v1997_v59 = vpop.permute.xlu0 %1996  ;;  %v3181_v1 = vpop.permute.xlu1 %2001 }
 0x143   :  { %2429 = vmatmul.mubr.msk.bf16.vlgmr.msra.gmra.mrb[16].mxu1 %vm131_vm2, %v3036_v4 }
 0x144   :  { %2437 = vmatpush3.bf16.msra.mxu1 %v3006_v55  ;;  %2432 = vmatprep.mubr.msk.bf16.mxu1 %vm131_vm2, %v3043_v6 }
 0x145   :  { %2446 = vmatprep.subr.bf16.mxu1 %v3010_v57 }
 0x147   :  { %2280 = vmatmul.mubr.msk.bf16.gmra.mrb[12].mxu0 %vm131_vm2, %v2727_v23 }
 0x148   :  { %1638 = vmatprep.mubr.bf16.mxu0 %v2839_v0 }
 0x14b   :  { %2433 = vmatmul.mubr.msk.bf16.gmra.mrb[20].mxu1 %vm131_vm2, %v3050_v8 }
 0x14c   :  { %2438 = vmatprep.mubr.msk.bf16.mxu1 %vm131_vm2, %v3057_v9 }
 0x14f   :  { %2289 = vmatmul.mubr.msk.bf16.vlgmr.msra.gmra.mrb[0].mxu0 %vm131_vm2, %v2728_v26 }
 0x150   :  { %1825 = vmatpush1.bf16.msra.mxu0 %v1806_v28  ;;  %1648 = vmatprep.mubr.bf16.mxu0 %v2839_v0 }
 0x153   :  { %2439 = vmatmul.mubr.msk.bf16.vlgmr.msra.gmra.mrb[16].mxu1 %vm131_vm2, %v3071_v10 }
 0x154   :  { %2447 = vmatpush3.bf16.msra.mxu1 %v3010_v57  ;;  %2442 = vmatprep.mubr.msk.bf16.mxu1 %vm131_vm2, %v3078_v15 }
 0x155   :  { %2456 = vmatprep.subr.bf16.mxu1 %v3022_v62 }
 0x157   :  { %2290 = vmatmul.mubr.msk.bf16.gmra.mrb[4].mxu0 %vm131_vm2, %v2729_v32 }
 0x158   :  { %1658 = vmatprep.mubr.bf16.mxu0 %v2839_v0 }
 0x15b   :  { %2443 = vmatmul.mubr.msk.bf16.gmra.mrb[20].mxu1 %vm131_vm2, %v3089_v16 }
 0x15c   :  { %2448 = vmatprep.mubr.msk.bf16.mxu1 %vm131_vm2, %v2724_v11  ;;  %v2007_v16 = vpop.permute.xlu1 %2006 }
 0x15f   :  { %2291 = vmatmul.mubr.msk.bf16.gmra.mrb[8].mxu0 %vm131_vm2, %v2730_v35 }
 0x160   :  { %1668 = vmatprep.mubr.bf16.mxu0 %v2839_v0 }
 0x163   :  { %2449 = vmatmul.mubr.msk.bf16.vlgmr.msra.gmra.mrb[16].mxu1 %vm131_vm2, %v2725_v20 }
 0x164   :  { %2457 = vmatpush3.bf16.msra.mxu1 %v3022_v62  ;;  %2452 = vmatprep.mubr.msk.bf16.mxu1 %vm131_vm2, %v2726_v21  ;;  %v2012_v21 = vpop.permute.xlu0 %2011 }
 0x165   :  { %2466 = vmatprep.subr.bf16.mxu1 %v1808_v37 }
 0x167   :  { %2292 = vmatmul.mubr.msk.bf16.gmra.mrb[12].mxu0 %vm131_vm2, %v2731_v38 }
 0x168   :  { %1856 = vmatprep.mubr.bf16.mxu0 %v2839_v0 }
 0x16b   :  { %2453 = vmatmul.mubr.msk.bf16.gmra.mrb[20].mxu1 %vm131_vm2, %v2727_v23 }
 0x16c   :  { %2458 = vmatprep.mubr.msk.bf16.mxu1 %vm131_vm2, %v2728_v26 }
 0x16f   :  { %2301 = vmatmul.mubr.msk.bf16.vlgmr.msra.gmra.mrb[0].mxu0 %vm131_vm2, %v2732_v39 }
 0x170   :  { %1866 = vmatprep.mubr.bf16.mxu0 %v2839_v0 }
 0x173   :  { %2459 = vmatmul.mubr.msk.bf16.vlgmr.msra.gmra.mrb[16].mxu1 %vm131_vm2, %v2729_v32 }
 0x174   :  { %2467 = vmatpush3.bf16.msra.mxu1 %v1808_v37  ;;  %2462 = vmatprep.mubr.msk.bf16.mxu1 %vm131_vm2, %v2730_v35 }
 0x177   :  { %2302 = vmatmul.mubr.msk.bf16.gmra.mrb[4].mxu0 %vm131_vm2, %v2733_v40 }
 0x178   :  { %1876 = vmatprep.mubr.bf16.mxu0 %v2839_v0 }
 0x17b   :  { %2463 = vmatmul.mubr.msk.bf16.gmra.mrb[20].mxu1 %vm131_vm2, %v2731_v38 }
 0x17c   :  { %2468 = vmatprep.mubr.msk.bf16.mxu1 %vm131_vm2, %v2732_v39 }
 0x17f   :  { %2303 = vmatmul.mubr.msk.bf16.gmra.mrb[8].mxu0 %vm131_vm2, %v2734_v41 }
 0x180   :  { %1886 = vmatprep.mubr.bf16.mxu0 %v2839_v0 }
 0x183   :  { %2469 = vmatmul.mubr.msk.bf16.vlgmr.msra.gmra.mrb[16].mxu1 %vm131_vm2, %v2733_v40  ;;  %v2017_v40 = vpop.permute.xlu1 %2016 }
 0x184   :  { %2472 = vmatprep.mubr.msk.bf16.mxu1 %vm131_vm2, %v2734_v41 }
 0x187   :  { %2304 = vmatmul.mubr.msk.bf16.gmra.mrb[12].mxu0 %vm131_vm2, %v2735_v42 }
 0x18b   :  { %2473 = vmatmul.mubr.msk.bf16.gmra.mrb[20].mxu1 %vm131_vm2, %v2735_v42 }
 0x1be   :  { %v356_v43 = vpop.f32.mrb[0].mxu1 }
 0x1bf   :  { %v358_v44 = vpop.f32.mrb[1].mxu1 }
 0x1c0   :  { %v360_v45 = vpop.f32.mrb[2].mxu1 }
 0x1c1   :  { %v362_v46 = vpop.f32.mrb[3].mxu1 }
 0x1c6   :  { %v366_v47 = vpop.f32.mrb[4].mxu1 }
 0x1c7   :  { %v368_v48 = vpop.f32.mrb[5].mxu1 }
 0x1c8   :  { %v370_v49 = vpop.f32.mrb[6].mxu1 }
 0x1c9   :  { %v372_v50 = vpop.f32.mrb[7].mxu1 }
 0x1ce   :  { %v376_v51 = vpop.f32.mrb[8].mxu1 }
 0x1cf   :  { %v378_v52 = vpop.f32.mrb[9].mxu1 }
 0x1d0   :  { %v380_v0 = vpop.f32.mrb[10].mxu1 }
 0x1d1   :  { %v382_v53 = vpop.f32.mrb[11].mxu1 }
 0x1ee   :  { %v3173_v54 = vpop.f32.mrb[12].mxu1 }
 0x1ef   :  { %v3175_v55 = vpop.f32.mrb[13].mxu1 }
 0x1f0   :  { %v3177_v56 = vpop.f32.mrb[14].mxu1 }
 0x1f1   :  { %v3179_v57 = vpop.f32.mrb[15].mxu1 }
 0x242   :  { %v1858_v58 = vpop.f32.mrb[0].mxu0 }
 0x243   :  { %v2478_v60 = vadd.f32 %v1858_v58, %v356_v43  ;;  %v1860_v61 = vpop.f32.mrb[1].mxu0 }
 0x244   :  { %v2479_v62 = vadd.f32 %v1860_v61, %v358_v44  ;;  %v1862_v63 = vpop.f32.mrb[2].mxu0 }
 0x245   :  { %v2034_v2 = vadd.f32 %v2478_v60, %v1997_v59  ;;  %v2480_v3 = vadd.f32 %v1862_v63, %v360_v45  ;;  %v1864_v4 = vpop.f32.mrb[3].mxu0 }
 0x246   :  { %v2035_v5 = vadd.f32 %v2479_v62, %v1997_v59  ;;  %v2481_v6 = vadd.f32 %v1864_v4, %v362_v46  ;;  %v2022_v46 = vpop.permute.xlu0 %2021 }
 0x247   :  { %v2058_v7 = vmax.f32 %v2034_v2, 0.0  ;;  %v2037_v8 = vadd.f32 %v2480_v3, %v3181_v1 }
 0x248   :  { %v2059_v9 = vmax.f32 %v2035_v5, 0.0  ;;  %v2038_v12 = vadd.f32 %v2481_v6, %v3181_v1 }
 0x249   :  { %v2061_v13 = vmax.f32 %v2037_v8, 0.0 }
 0x24a   :  { %v2325_v10 = vpack.c.bf16 %v2059_v9, %v2058_v7  ;;  %v2062_v14 = vmax.f32 %v2038_v12, 0.0  ;;  %v1868_v15 = vpop.f32.mrb[4].mxu0 }
 0x24b   :  { %v2482_v11 = vadd.f32 %v1868_v15, %v366_v47  ;;  %v1870_v17 = vpop.f32.mrb[5].mxu0  ;;  %v2027_v15 = vpop.permute.xlu1 %2026 }
 0x24c   :  { %2162 = vst [vmem:[#allocation8] sm:$0xff] %v2325_v10  ;;  %v2327_v18 = vpack.c.bf16 %v2062_v14, %v2061_v13  ;;  %v2483_v19 = vadd.f32 %v1870_v17, %v368_v48  ;;  %v1872_v20 = vpop.f32.mrb[6].mxu0 }
 0x24d   :  { %v2484_v22 = vadd.f32 %v1872_v20, %v370_v49  ;;  %v2040_v23 = vadd.f32 %v2482_v11, %v2007_v16  ;;  %v1874_v24 = vpop.f32.mrb[7].mxu0  ;;  %v2032_v20 = vpop.permute.xlu0 %2031 }
 0x24e   :  { %2164 = vst [vmem:[#allocation8 + $0xc] sm:$0xff] %v2327_v18  ;;  %v2041_v25 = vadd.f32 %v2483_v19, %v2007_v16  ;;  %v2485_v26 = vadd.f32 %v1874_v24, %v372_v50 }
 0x24f   :  { %v2064_v27 = vmax.f32 %v2040_v23, 0.0  ;;  %v2043_v28 = vadd.f32 %v2484_v22, %v2012_v21 }
 0x250   :  { %v2065_v29 = vmax.f32 %v2041_v25, 0.0  ;;  %v2044_v30 = vadd.f32 %v2485_v26, %v2012_v21 }
 0x251   :  { %v2067_v31 = vmax.f32 %v2043_v28, 0.0 }
 0x252   :  { %v2329_v32 = vpack.c.bf16 %v2065_v29, %v2064_v27  ;;  %v2068_v33 = vmax.f32 %v2044_v30, 0.0  ;;  %v1878_v34 = vpop.f32.mrb[8].mxu0 }
 0x253   :  { %v2486_v35 = vadd.f32 %v1878_v34, %v376_v51  ;;  %v1880_v36 = vpop.f32.mrb[9].mxu0 }
 0x254   :  { %2166 = vst [vmem:[#allocation8 + $0x18] sm:$0xff] %v2329_v32  ;;  %v2331_v37 = vpack.c.bf16 %v2068_v33, %v2067_v31  ;;  %v2487_v38 = vadd.f32 %v1880_v36, %v378_v52  ;;  %v1882_v39 = vpop.f32.mrb[10].mxu0 }
 0x255   :  { %v2488_v41 = vadd.f32 %v1882_v39, %v380_v0  ;;  %v2046_v42 = vadd.f32 %v2486_v35, %v2017_v40  ;;  %v1884_v43 = vpop.f32.mrb[11].mxu0 }
 0x256   :  { %2168 = vst [vmem:[#allocation8 + $0x24] sm:$0xff] %v2331_v37  ;;  %v2047_v44 = vadd.f32 %v2487_v38, %v2017_v40  ;;  %v2489_v45 = vadd.f32 %v1884_v43, %v382_v53  ;;  %v2470_v47 = vpop.f32.mrb[16].mxu1 }
 0x257   :  { %v2070_v48 = vmax.f32 %v2046_v42, 0.0  ;;  %v2049_v49 = vadd.f32 %v2488_v41, %v2022_v46  ;;  %v2042_v50 = vadd.f32 %v2470_v47, %v2007_v16  ;;  %v1931_v58 = vpop.f32.mrb[17].mxu1 }
 0x258   :  { %v2071_v60 = vmax.f32 %v2047_v44, 0.0  ;;  %v2050_v51 = vadd.f32 %v2489_v45, %v2022_v46  ;;  %v2036_v61 = vadd.f32 %v1997_v59, %v1931_v58  ;;  %v2471_v62 = vpop.f32.mrb[18].mxu1 }
 0x259   :  { %v2073_v63 = vmax.f32 %v2049_v49, 0.0  ;;  %v2066_v52 = vmax.f32 %v2042_v50, 0.0  ;;  %v2045_v2 = vadd.f32 %v2471_v62, %v2012_v21  ;;  %v1934_v3 = vpop.f32.mrb[19].mxu1 }
 0x25a   :  { %v2333_v0 = vpack.c.bf16 %v2071_v60, %v2070_v48  ;;  %v2074_v4 = vmax.f32 %v2050_v51, 0.0  ;;  %v2060_v5 = vmax.f32 %v2036_v61, 0.0  ;;  %v2039_v6 = vadd.f32 %v3181_v1, %v1934_v3  ;;  %v1888_v53 = vpop.f32.mrb[12].mxu0 }
 0x25b   :  { %v2330_v7 = vpack.c.bf16 %v2066_v52, %v2066_v52  ;;  %v2069_v8 = vmax.f32 %v2045_v2, 0.0  ;;  %v2490_v9 = vadd.f32 %v1888_v53, %v3173_v54  ;;  %v1890_v12 = vpop.f32.mrb[13].mxu0 }
 0x25c   :  { %2170 = vst [vmem:[#allocation8 + $0x30] sm:$0xff] %v2333_v0  ;;  %v2335_v13 = vpack.c.bf16 %v2074_v4, %v2073_v63  ;;  %v2326_v10 = vpack.c.bf16 %v2060_v5, %v2060_v5  ;;  %v2063_v59 = vmax.f32 %v2039_v6, 0.0  ;;  %v2491_v14 = vadd.f32 %v1890_v12, %v3175_v55  ;;  %v1892_v16 = vpop.f32.mrb[14].mxu0 }
 0x25d   :  { %2167 = vst [vmem:[#allocation8 + $0x20] sm:$0xf] %v2330_v7  ;;  %v2332_v11 = vpack.c.bf16 %v2069_v8, %v2069_v8  ;;  %v2052_v17 = vadd.f32 %v2490_v9, %v2027_v15  ;;  %v2492_v18 = vadd.f32 %v1892_v16, %v3177_v56  ;;  %v1894_v1 = vpop.f32.mrb[15].mxu0 }
 0x25e   :  { %2172 = vst [vmem:[#allocation8 + $0x3c] sm:$0xff] %v2335_v13  ;;  %2163 = vst [vmem:[#allocation8 + $0x8] sm:$0xf] %v2326_v10  ;;  %v2328_v19 = vpack.c.bf16 %v2063_v59, %v2063_v59  ;;  %v2053_v54 = vadd.f32 %v2491_v14, %v2027_v15  ;;  %v2493_v21 = vadd.f32 %v1894_v1, %v3179_v57  ;;  %v2474_v22 = vpop.f32.mrb[20].mxu1 }
 0x25f   :  { %2169 = vst [vmem:[#allocation8 + $0x2c] sm:$0xf] %v2332_v11  ;;  %v2076_v23 = vmax.f32 %v2052_v17, 0.0  ;;  %v2055_v24 = vadd.f32 %v2492_v18, %v2032_v20  ;;  %v2054_v55 = vadd.f32 %v2474_v22, %v2027_v15  ;;  %v1947_v25 = vpop.f32.mrb[21].mxu1 }
 0x260   :  { %2165 = vst [vmem:[#allocation8 + $0x14] sm:$0xf] %v2328_v19  ;;  %v2077_v26 = vmax.f32 %v2053_v54, 0.0  ;;  %v2056_v27 = vadd.f32 %v2493_v21, %v2032_v20  ;;  %v2048_v28 = vadd.f32 %v2017_v40, %v1947_v25  ;;  %v2475_v29 = vpop.f32.mrb[22].mxu1 }
 0x261   :  { %v2079_v56 = vmax.f32 %v2055_v24, 0.0  ;;  %v2078_v30 = vmax.f32 %v2054_v55, 0.0  ;;  %v2057_v31 = vadd.f32 %v2475_v29, %v2032_v20  ;;  %v1950_v32 = vpop.f32.mrb[23].mxu1 }
 0x262   :  { %v2337_v33 = vpack.c.bf16 %v2077_v26, %v2076_v23  ;;  %v2080_v34 = vmax.f32 %v2056_v27, 0.0  ;;  %v2072_v35 = vmax.f32 %v2048_v28, 0.0  ;;  %v2051_v36 = vadd.f32 %v2022_v46, %v1950_v32 }
 0x263   :  { %v2338_v57 = vpack.c.bf16 %v2078_v30, %v2078_v30  ;;  %v2081_v37 = vmax.f32 %v2057_v31, 0.0 }
 0x264   :  { %2174 = vst [vmem:[#allocation8 + $0x48] sm:$0xff] %v2337_v33  ;;  %v2339_v38 = vpack.c.bf16 %v2080_v34, %v2079_v56  ;;  %v2334_v39 = vpack.c.bf16 %v2072_v35, %v2072_v35  ;;  %v2075_v41 = vmax.f32 %v2051_v36, 0.0 }
 0x265   :  { %2175 = vst [vmem:[#allocation8 + $0x50] sm:$0xf] %v2338_v57  ;;  %v2340_v42 = vpack.c.bf16 %v2081_v37, %v2081_v37 }
 0x266   :  { %2176 = vst [vmem:[#allocation8 + $0x54] sm:$0xff] %v2339_v38  ;;  %2171 = vst [vmem:[#allocation8 + $0x38] sm:$0xf] %v2334_v39  ;;  %v2336_v40 = vpack.c.bf16 %v2075_v41, %v2075_v41 }
 0x267   :  { %2177 = vst [vmem:[#allocation8 + $0x5c] sm:$0xf] %v2340_v42 }
 0x268   :  { %2173 = vst [vmem:[#allocation8 + $0x44] sm:$0xf] %v2336_v40 }
 0x269   :  { %2813 = shalt.err (!%p2810_p0)
}
 0x26a   :  { %s2814_s9 = scalar_lea.hbm %s3205_s3, 1536 }
 0x26b   :  { %p2815_p1 = scmp.ne.s32.totalorder %s3205_s3, %s2814_s9  ;;  %p2818_p2 = scmp.lt.u32.totalorder %s2814_s9, %s3205_s3 }
 0x26d   :  { %p2820_p3 = pnand %p2818_p2, %p2815_p1 }
 0x26f   :  { %2823 = shalt.err (!%p2820_p3)
}
 0x270   :  { %s2849_s14 = smov 192   ;;  %s2850_s15 = smov 12  }
 0x271   :  { %2189 = dma.vmem_to_hbm [thread:$0]  %s2184_s6, 1536, %s3205_s3, [#allocation4], %s2849_s14, %s2849_s14, %s2850_s15  }
 0x272   :  { %2828 = dma.done.wait [#allocation4], 1536  }
 0x273   :  { %2829 = vsyncadd [#allocation4], 4294965760 }
 0x274   :  { %2193 = vsyncpa [#allocation3], 1 }
 0x275   :  { %2194 = vsyncpa [#allocation6], 1 }
 0x276   :  { %2195 = vsyncpa [#allocation4], 1 }

</bundles_post_ra>
